<compile_context>
chip_gen: v7x
topology: tpu7x:2x2x1
jax: 0.10.0
libtpu: 0.0.40
codegen_flags: <defaults>
</compile_context>

<pallas_src>
import jax
import jax.numpy as jnp
from jax.experimental import pallas as pl
from jax.experimental.pallas import tpu as pltpu


# ----------------------------- Pallas kernel -------------------------------

def gatv2_kernel(xl_p_ref, xr_p_ref, ep_ref, mask_ref, attbd_ref, xlh_ref,
                 bias_ref, out_ref):
    """One tile of target nodes; all heads processed lane-packed in one pass."""
    TM = xr_p_ref.shape[0]
    N, HC = xl_p_ref.shape
    H = attbd_ref.shape[1]
    C = xlh_ref.shape[2]

    xl_p = xl_p_ref[...]                       # [N, HC]  bf16 (source proj, lin_l)
    xr_p = xr_p_ref[...]                       # [TM, HC] bf16 (target proj, lin_r)
    ep = ep_ref[...]                           # [TM, N, HC] bf16 (lin_edge, dense)

    # GATv2 score, heads packed on the lane axis (HC = H*C lanes -> lane dense).
    s = xl_p[None, :, :] + xr_p[:, None, :] + ep
    s = jnp.where(s >= 0, s, 0.2 * s)          # LeakyReLU(0.2)

    # att-weighted channel reduction on the MXU: [TM*N, HC] @ [HC, H] -> logits.
    logits = jnp.dot(s.reshape(TM * N, HC), attbd_ref[...],
                     preferred_element_type=jnp.float32)
    logits = logits.reshape(TM, N, H) + mask_ref[...]      # additive mask (TM,N,1)

    # Masked softmax over sources j (axis=1).  Every target has a self loop, so
    # the row max is finite and masked entries underflow to exactly 0.
    m = jnp.max(logits, axis=1, keepdims=True)             # [TM, 1, H]
    p = jnp.exp(logits - m)                                # [TM, N, H]
    denom = jnp.sum(p, axis=1, keepdims=True)              # [TM, 1, H]  (>= 1)
    alpha = p * pl.reciprocal(denom, approx=True)          # EUP reciprocal, no divides
    # TODO(synk): attention dropout skipped (eval-mode no-op).

    # Per-head aggregation on the MXU, mean over heads, bias, LeakyReLU(0.2).
    acc = jnp.zeros((TM, C), jnp.float32)
    for h in range(H):                                     # static unroll (H small)
        acc = acc + jnp.dot(alpha[:, :, h], xlh_ref[h],
                            preferred_element_type=jnp.float32)
    out = acc * (1.0 / H) + bias_ref[...]
    out_ref[...] = jnp.where(out >= 0, out, 0.2 * out)


def _choose_tm(n, hc, itemsize=2, budget_bytes=8 << 20):
    """Largest target tile TM whose eproj block (TM, n, hc) fits one buffer
    budget; keeps double-buffered eproj <= 16 MiB, safe on v7x's 64 MiB VMEM."""
    if n * n * hc * itemsize <= budget_bytes:
        return n
    tm = (budget_bytes // (n * hc * itemsize)) // 8 * 8
    return int(max(8, min(tm, n)))


def gatv2_pallas(xl_p, xr_p, xl_heads, eproj, addmask, att_bd, bias):
    N, HC = xl_p.shape
    H = att_bd.shape[1]
    C = xl_heads.shape[2]
    tm = _choose_tm(N, HC)
    grid = (pl.cdiv(N, tm),)

    return pl.pallas_call(
        gatv2_kernel,
        out_shape=jax.ShapeDtypeStruct((N, C), jnp.float32),
        grid_spec=pltpu.PrefetchScalarGridSpec(
            num_scalar_prefetch=0,
            grid=grid,
            in_specs=[
                pl.BlockSpec((N, HC), lambda i: (0, 0)),         # xl packed (K side)
                pl.BlockSpec((tm, HC), lambda i: (i, 0)),        # xr packed
                pl.BlockSpec((tm, N, HC), lambda i: (i, 0, 0)),  # eproj (streamed)
                pl.BlockSpec((tm, N, 1), lambda i: (i, 0, 0)),   # additive mask
                pl.BlockSpec((HC, H), lambda i: (0, 0)),         # block-diag att
                pl.BlockSpec((H, N, C), lambda i: (0, 0, 0)),    # per-head xl
                pl.BlockSpec((1, C), lambda i: (0, 0)),          # bias
            ],
            out_specs=pl.BlockSpec((tm, C), lambda i: (i, 0)),
        ),
        compiler_params=pltpu.CompilerParams(
            dimension_semantics=("parallel",),      # v7x: both TCs share the tiles
            vmem_limit_bytes=40 * 1024 * 1024),
    )(xl_p, xr_p, eproj, addmask, att_bd, xl_heads, bias)


# ----------------------------- JAX glue -------------------------------------

def gnn_layer_gatv2_forward(x, edge_index, edges_attr, params, *, heads, out_ch):
    """Full forward of GNN_layer_GATv2 (glue in JAX, hot path in Pallas)."""
    N = x.shape[0]
    H, C = heads, out_ch
    HC = H * C
    Wl, bl, Wr, br, We, att, bias = (params[k] for k in
                                     ("Wl", "bl", "Wr", "br", "We", "att", "bias"))

    src, dst = edge_index[0], edge_index[1]
    E = src.shape[0]

    # add_self_loops(fill_value='mean'): self-loop attr = mean of incoming edge attrs
    seg_sum = jax.ops.segment_sum(edges_attr, dst, num_segments=N)
    counts = jax.ops.segment_sum(jnp.ones((E,), jnp.float32), dst, num_segments=N)
    loop_attr = seg_sum / jnp.maximum(counts, 1.0)[:, None]

    src_full = jnp.concatenate([src, jnp.arange(N, dtype=src.dtype)])
    dst_full = jnp.concatenate([dst, jnp.arange(N, dtype=dst.dtype)])
    attr_full = jnp.concatenate([edges_attr, loop_attr], axis=0)

    # node projections, heads packed along the channel/lane axis: [N, H*C]
    xl_p = x @ Wl + bl
    xr_p = x @ Wr + br
    xl_heads = xl_p.reshape(N, H, C).transpose(1, 0, 2)     # [H, N, C] for aggregation

    # dense edge projection [N(target), N(source), H*C]; bf16 halves HBM traffic.
    # TODO(synk): truly sparse graphs should use a CSR/scalar-prefetch layout
    #             instead of densifying; duplicate edges would overwrite here.
    eproj = (jnp.zeros((N, N, HC), jnp.float32)
             .at[dst_full, src_full].set(attr_full @ We)).astype(jnp.bfloat16)

    # additive mask (0 / -1e30), pre-shaped (N, N, 1) so no in-kernel relayout
    adj = jnp.zeros((N, N), jnp.float32).at[dst_full, src_full].set(1.0)
    addmask = jnp.where(adj > 0, 0.0, -1e30)[:, :, None].astype(jnp.float32)

    # block-diagonal attention matrix so logits = leaky(s) @ att_bd runs on the MXU
    att_bd = (jnp.zeros((HC, H), jnp.float32)
              .at[jnp.arange(HC), jnp.arange(HC) // C].set(att.reshape(HC)))

    return gatv2_pallas(xl_p.astype(jnp.bfloat16), xr_p.astype(jnp.bfloat16),
                        xl_heads.astype(jnp.float32), eproj, addmask,
                        att_bd.astype(jnp.bfloat16),
                        bias.reshape(1, C).astype(jnp.float32))


def reference_forward(x, edge_index, edges_attr, params, *, heads, out_ch):
    """Pure-JAX dense fp32 reference (same math) for a correctness check."""
    N, _ = x.shape
    H, C = heads, out_ch
    Wl, bl, Wr, br, We, att, bias = (params[k] for k in
                                     ("Wl", "bl", "Wr", "br", "We", "att", "bias"))
    src, dst = edge_index[0], edge_index[1]
    E = src.shape[0]
    seg_sum = jax.ops.segment_sum(edges_attr, dst, num_segments=N)
    counts = jax.ops.segment_sum(jnp.ones((E,), jnp.float32), dst, num_segments=N)
    loop_attr = seg_sum / jnp.maximum(counts, 1.0)[:, None]
    src_full = jnp.concatenate([src, jnp.arange(N, dtype=src.dtype)])
    dst_full = jnp.concatenate([dst, jnp.arange(N, dtype=dst.dtype)])
    attr_full = jnp.concatenate([edges_attr, loop_attr], axis=0)

    xl = (x @ Wl + bl).reshape(N, H, C).transpose(1, 0, 2)
    xr = (x @ Wr + br).reshape(N, H, C).transpose(1, 0, 2)
    mask = jnp.zeros((N, N), jnp.float32).at[dst_full, src_full].set(1.0)
    eproj = (jnp.zeros((N, N, H * C), jnp.float32)
             .at[dst_full, src_full].set(attr_full @ We)
             .reshape(N, N, H, C).transpose(2, 0, 1, 3))

    s = xl[:, None, :, :] + xr[:, :, None, :] + eproj
    s = jnp.where(s >= 0, s, 0.2 * s)
    logits = jnp.sum(s * att.reshape(H, 1, 1, C), axis=-1)
    logits = jnp.where(mask[None] > 0, logits, -1e30)
    m = jnp.max(logits, axis=-1, keepdims=True)
    p = jnp.where(mask[None] > 0, jnp.exp(logits - m), 0.0)
    alpha = p / (jnp.sum(p, axis=-1, keepdims=True) + 1e-16)
    out = jnp.einsum('hij,hjc->hic', alpha, xl).mean(0) + bias[None, :]
    return jnp.where(out >= 0, out, 0.2 * out)


# ----------------------------- Main ------------------------------------------

if __name__ == "__main__":
    N, IN_CH, OUT_CH, EDGE_DIM, HEADS, E = 16, 8, 32, 4, 4, 40   # H*C = 128 lanes

    key = jax.random.PRNGKey(0)
    kx, ke, ka, kwl, kbl, kwr, kbr, kwe, katt, kb = jax.random.split(key, 10)

    # inputs: node features, edge_index [2,E] (no self-loops, no duplicates), edge attrs
    x = jax.random.normal(kx, (N, IN_CH), jnp.float32)
    ii, jj = jnp.meshgrid(jnp.arange(N), jnp.arange(N), indexing='ij')
    off = ii != jj
    src_all, dst_all = ii[off], jj[off]
    sel = jax.random.choice(ke, src_all.shape[0], shape=(E,), replace=False)
    edge_index = jnp.stack([src_all[sel], dst_all[sel]]).astype(jnp.int32)
    edges_attr = jax.random.normal(ka, (E, EDGE_DIM), jnp.float32)

    # deterministic synthetic parameters (GATv2Conv shapes, concat=False)
    scale = 0.1
    params = dict(
        Wl=scale * jax.random.normal(kwl, (IN_CH, HEADS * OUT_CH), jnp.float32),
        bl=scale * jax.random.normal(kbl, (HEADS * OUT_CH,), jnp.float32),
        Wr=scale * jax.random.normal(kwr, (IN_CH, HEADS * OUT_CH), jnp.float32),
        br=scale * jax.random.normal(kbr, (HEADS * OUT_CH,), jnp.float32),
        We=scale * jax.random.normal(kwe, (EDGE_DIM, HEADS * OUT_CH), jnp.float32),
        att=scale * jax.random.normal(katt, (HEADS, OUT_CH), jnp.float32),
        bias=scale * jax.random.normal(kb, (OUT_CH,), jnp.float32),
    )

    out = gnn_layer_gatv2_forward(x, edge_index, edges_attr, params,
                                  heads=HEADS, out_ch=OUT_CH)
    out = jax.block_until_ready(out)

    ref = reference_forward(x, edge_index, edges_attr, params,
                            heads=HEADS, out_ch=OUT_CH)
    assert out.shape == (N, OUT_CH)
    # Tolerance loosened vs the fp32 reference to cover the intentional bf16
    # score path + approximate EUP reciprocal (expected precision change).
    assert jnp.allclose(out, ref, rtol=2e-2, atol=3e-3), "mismatch vs reference"
    print("KERNEL_OK")
</pallas_src>

<mosaic_0001>
module attributes {stable_mosaic.version = 11 : i64} {
  func.func @gatv2_kernel(%arg0: i32, %arg1: memref<16x128xbf16, #tpu.memory_space<vmem>>, %arg2: memref<16x128xbf16, #tpu.memory_space<vmem>>, %arg3: memref<16x16x128xbf16, #tpu.memory_space<vmem>>, %arg4: memref<16x16x1xf32, #tpu.memory_space<vmem>>, %arg5: memref<128x4xbf16, #tpu.memory_space<vmem>>, %arg6: memref<4x16x32xf32, #tpu.memory_space<vmem>>, %arg7: memref<1x32xf32, #tpu.memory_space<vmem>>, %arg8: memref<16x32xf32, #tpu.memory_space<vmem>>) attributes {dimension_semantics = [#tpu.dimension_semantics<parallel>], iteration_bounds = array<i64: 1>, scalar_prefetch = 0 : i64, scratch_operands = 0 : i64, tpu.core_type = #tpu.core_type<tc>, window_params = [{pipeline_mode = #tpu.pipeline_mode<synchronous>, transform_indices = @transform_0, window_bounds = array<i64: 16, 128>}, {transform_indices = @transform_1, window_bounds = array<i64: 16, 128>}, {transform_indices = @transform_2, window_bounds = array<i64: 16, 16, 128>}, {transform_indices = @transform_3, window_bounds = array<i64: 16, 16, 1>}, {pipeline_mode = #tpu.pipeline_mode<synchronous>, transform_indices = @transform_4, window_bounds = array<i64: 128, 4>}, {pipeline_mode = #tpu.pipeline_mode<synchronous>, transform_indices = @transform_5, window_bounds = array<i64: 4, 16, 32>}, {pipeline_mode = #tpu.pipeline_mode<synchronous>, transform_indices = @transform_6, window_bounds = array<i64: 1, 32>}, {transform_indices = @transform_7, window_bounds = array<i64: 16, 32>}]} {
    %c0 = arith.constant 0 : index
    %c0_0 = arith.constant 0 : index
    %0 = vector.load %arg1[%c0, %c0_0] : memref<16x128xbf16, #tpu.memory_space<vmem>>, vector<16x128xbf16>
    %c0_1 = arith.constant 0 : index
    %c0_2 = arith.constant 0 : index
    %1 = vector.load %arg2[%c0_1, %c0_2] : memref<16x128xbf16, #tpu.memory_space<vmem>>, vector<16x128xbf16>
    %c0_3 = arith.constant 0 : index
    %c0_4 = arith.constant 0 : index
    %c0_5 = arith.constant 0 : index
    %2 = vector.load %arg3[%c0_3, %c0_4, %c0_5] : memref<16x16x128xbf16, #tpu.memory_space<vmem>>, vector<16x16x128xbf16>
    %3 = vector.shape_cast %0 : vector<16x128xbf16> to vector<1x16x128xbf16>
    %4 = vector.shape_cast %1 : vector<16x128xbf16> to vector<16x1x128xbf16>
    %5 = vector.broadcast %3 : vector<1x16x128xbf16> to vector<16x16x128xbf16>
    %6 = vector.broadcast %4 : vector<16x1x128xbf16> to vector<16x16x128xbf16>
    %7 = arith.addf %5, %6 : vector<16x16x128xbf16>
    %8 = arith.addf %7, %2 : vector<16x16x128xbf16>
    %cst = arith.constant 0.000000e+00 : bf16
    %9 = vector.broadcast %cst : bf16 to vector<16x16x128xbf16>
    %10 = arith.cmpf oge, %8, %9 : vector<16x16x128xbf16>
    %cst_6 = arith.constant 2.001950e-01 : bf16
    %11 = vector.broadcast %cst_6 : bf16 to vector<16x16x128xbf16>
    %12 = arith.mulf %11, %8 : vector<16x16x128xbf16>
    %13 = arith.select %10, %8, %12 : vector<16x16x128xi1>, vector<16x16x128xbf16>
    %14 = vector.shape_cast %13 : vector<16x16x128xbf16> to vector<256x128xbf16>
    %c0_7 = arith.constant 0 : index
    %c0_8 = arith.constant 0 : index
    %15 = vector.load %arg5[%c0_7, %c0_8] : memref<128x4xbf16, #tpu.memory_space<vmem>>, vector<128x4xbf16>
    %cst_9 = arith.constant dense<0.000000e+00> : vector<256x4xf32>
    %16 = tpu.matmul %14, %15, %cst_9 {dimension_numbers = #tpu.dot_dimension_numbers<[1], [0], [0], [1], [0, 0, 1, 1], [], []>} : vector<256x128xbf16>, vector<128x4xbf16>, vector<256x4xf32> -> vector<256x4xf32>
    %17 = vector.shape_cast %16 : vector<256x4xf32> to vector<16x16x4xf32>
    %c0_10 = arith.constant 0 : index
    %c0_11 = arith.constant 0 : index
    %c0_12 = arith.constant 0 : index
    %18 = vector.load %arg4[%c0_10, %c0_11, %c0_12] : memref<16x16x1xf32, #tpu.memory_space<vmem>>, vector<16x16x1xf32>
    %19 = vector.broadcast %18 : vector<16x16x1xf32> to vector<16x16x4xf32>
    %20 = arith.addf %17, %19 : vector<16x16x4xf32>
    %cst_13 = arith.constant dense<0xFF800000> : vector<16x4xf32>
    %21 = vector.multi_reduction <maximumf>, %20, %cst_13 [1] : vector<16x16x4xf32> to vector<16x4xf32>
    %22 = vector.shape_cast %21 : vector<16x4xf32> to vector<16x1x4xf32>
    %23 = vector.broadcast %22 : vector<16x1x4xf32> to vector<16x16x4xf32>
    %24 = arith.subf %20, %23 : vector<16x16x4xf32>
    %25 = math.exp %24 : vector<16x16x4xf32>
    %cst_14 = arith.constant dense<0.000000e+00> : vector<16x4xf32>
    %26 = vector.multi_reduction <add>, %25, %cst_14 [1] : vector<16x16x4xf32> to vector<16x4xf32>
    %27 = vector.shape_cast %26 : vector<16x4xf32> to vector<16x1x4xf32>
    %28 = tpu.reciprocal %27 {approx = true} : vector<16x1x4xf32> -> vector<16x1x4xf32>
    %29 = vector.broadcast %28 : vector<16x1x4xf32> to vector<16x16x4xf32>
    %30 = arith.mulf %25, %29 : vector<16x16x4xf32>
    %cst_15 = arith.constant 0.000000e+00 : f32
    %31 = vector.broadcast %cst_15 : f32 to vector<16x32xf32>
    %32 = vector.extract_strided_slice %30 {offsets = [0, 0, 0], sizes = [16, 16, 1], strides = [1, 1, 1]} : vector<16x16x4xf32> to vector<16x16x1xf32>
    %33 = vector.shape_cast %32 : vector<16x16x1xf32> to vector<16x16xf32>
    %c0_16 = arith.constant 0 : index
    %c0_17 = arith.constant 0 : index
    %c0_18 = arith.constant 0 : index
    %34 = vector.load %arg6[%c0_16, %c0_17, %c0_18] : memref<4x16x32xf32, #tpu.memory_space<vmem>>, vector<1x16x32xf32>
    %35 = vector.shape_cast %34 : vector<1x16x32xf32> to vector<16x32xf32>
    %cst_19 = arith.constant dense<0.000000e+00> : vector<16x32xf32>
    %36 = tpu.matmul %33, %35, %cst_19 {dimension_numbers = #tpu.dot_dimension_numbers<[1], [0], [0], [1], [0, 0, 1, 1], [], []>} : vector<16x16xf32>, vector<16x32xf32>, vector<16x32xf32> -> vector<16x32xf32>
    %37 = arith.addf %31, %36 : vector<16x32xf32>
    %38 = vector.extract_strided_slice %30 {offsets = [0, 0, 1], sizes = [16, 16, 1], strides = [1, 1, 1]} : vector<16x16x4xf32> to vector<16x16x1xf32>
    %39 = vector.shape_cast %38 : vector<16x16x1xf32> to vector<16x16xf32>
    %c1 = arith.constant 1 : index
    %c0_20 = arith.constant 0 : index
    %c0_21 = arith.constant 0 : index
    %40 = vector.load %arg6[%c1, %c0_20, %c0_21] : memref<4x16x32xf32, #tpu.memory_space<vmem>>, vector<1x16x32xf32>
    %41 = vector.shape_cast %40 : vector<1x16x32xf32> to vector<16x32xf32>
    %cst_22 = arith.constant dense<0.000000e+00> : vector<16x32xf32>
    %42 = tpu.matmul %39, %41, %cst_22 {dimension_numbers = #tpu.dot_dimension_numbers<[1], [0], [0], [1], [0, 0, 1, 1], [], []>} : vector<16x16xf32>, vector<16x32xf32>, vector<16x32xf32> -> vector<16x32xf32>
    %43 = arith.addf %37, %42 : vector<16x32xf32>
    %44 = vector.extract_strided_slice %30 {offsets = [0, 0, 2], sizes = [16, 16, 1], strides = [1, 1, 1]} : vector<16x16x4xf32> to vector<16x16x1xf32>
    %45 = vector.shape_cast %44 : vector<16x16x1xf32> to vector<16x16xf32>
    %c2 = arith.constant 2 : index
    %c0_23 = arith.constant 0 : index
    %c0_24 = arith.constant 0 : index
    %46 = vector.load %arg6[%c2, %c0_23, %c0_24] : memref<4x16x32xf32, #tpu.memory_space<vmem>>, vector<1x16x32xf32>
    %47 = vector.shape_cast %46 : vector<1x16x32xf32> to vector<16x32xf32>
    %cst_25 = arith.constant dense<0.000000e+00> : vector<16x32xf32>
    %48 = tpu.matmul %45, %47, %cst_25 {dimension_numbers = #tpu.dot_dimension_numbers<[1], [0], [0], [1], [0, 0, 1, 1], [], []>} : vector<16x16xf32>, vector<16x32xf32>, vector<16x32xf32> -> vector<16x32xf32>
    %49 = arith.addf %43, %48 : vector<16x32xf32>
    %50 = vector.extract_strided_slice %30 {offsets = [0, 0, 3], sizes = [16, 16, 1], strides = [1, 1, 1]} : vector<16x16x4xf32> to vector<16x16x1xf32>
    %51 = vector.shape_cast %50 : vector<16x16x1xf32> to vector<16x16xf32>
    %c3 = arith.constant 3 : index
    %c0_26 = arith.constant 0 : index
    %c0_27 = arith.constant 0 : index
    %52 = vector.load %arg6[%c3, %c0_26, %c0_27] : memref<4x16x32xf32, #tpu.memory_space<vmem>>, vector<1x16x32xf32>
    %53 = vector.shape_cast %52 : vector<1x16x32xf32> to vector<16x32xf32>
    %cst_28 = arith.constant dense<0.000000e+00> : vector<16x32xf32>
    %54 = tpu.matmul %51, %53, %cst_28 {dimension_numbers = #tpu.dot_dimension_numbers<[1], [0], [0], [1], [0, 0, 1, 1], [], []>} : vector<16x16xf32>, vector<16x32xf32>, vector<16x32xf32> -> vector<16x32xf32>
    %55 = arith.addf %49, %54 : vector<16x32xf32>
    %cst_29 = arith.constant 2.500000e-01 : f32
    %56 = vector.broadcast %cst_29 : f32 to vector<16x32xf32>
    %57 = arith.mulf %55, %56 : vector<16x32xf32>
    %c0_30 = arith.constant 0 : index
    %c0_31 = arith.constant 0 : index
    %58 = vector.load %arg7[%c0_30, %c0_31] : memref<1x32xf32, #tpu.memory_space<vmem>>, vector<1x32xf32>
    %59 = vector.broadcast %58 : vector<1x32xf32> to vector<16x32xf32>
    %60 = arith.addf %57, %59 : vector<16x32xf32>
    %cst_32 = arith.constant 0.000000e+00 : f32
    %61 = vector.broadcast %cst_32 : f32 to vector<16x32xf32>
    %62 = arith.cmpf oge, %60, %61 : vector<16x32xf32>
    %cst_33 = arith.constant 2.000000e-01 : f32
    %63 = vector.broadcast %cst_33 : f32 to vector<16x32xf32>
    %64 = arith.mulf %63, %60 : vector<16x32xf32>
    %65 = arith.select %62, %60, %64 : vector<16x32xi1>, vector<16x32xf32>
    %c0_34 = arith.constant 0 : index
    %c0_35 = arith.constant 0 : index
    %66 = vector.load %arg8[%c0_34, %c0_35] : memref<16x32xf32, #tpu.memory_space<vmem>>, vector<16x32xf32>
    tpu.vector_store %arg8[%c0_34, %c0_35], %65 {strides = array<i32>} : memref<16x32xf32, #tpu.memory_space<vmem>>, vector<16x32xf32>,
    return
  }
  func.func @transform_0(%arg0: i32) -> (i32, i32) {
    %c0_i32 = arith.constant 0 : i32
    %c0_i32_0 = arith.constant 0 : i32
    %c0_i32_1 = arith.constant 0 : i32
    return %c0_i32, %c0_i32_0 : i32, i32
  }
  func.func @transform_1(%arg0: i32) -> (i32, i32) {
    %c0_i32 = arith.constant 0 : i32
    %c0_i32_0 = arith.constant 0 : i32
    return %arg0, %c0_i32 : i32, i32
  }
  func.func @transform_2(%arg0: i32) -> (i32, i32, i32) {
    %c0_i32 = arith.constant 0 : i32
    %c0_i32_0 = arith.constant 0 : i32
    %c0_i32_1 = arith.constant 0 : i32
    return %arg0, %c0_i32, %c0_i32_0 : i32, i32, i32
  }
  func.func @transform_3(%arg0: i32) -> (i32, i32, i32) {
    %c0_i32 = arith.constant 0 : i32
    %c0_i32_0 = arith.constant 0 : i32
    %c0_i32_1 = arith.constant 0 : i32
    return %arg0, %c0_i32, %c0_i32_0 : i32, i32, i32
  }
  func.func @transform_4(%arg0: i32) -> (i32, i32) {
    %c0_i32 = arith.constant 0 : i32
    %c0_i32_0 = arith.constant 0 : i32
    %c0_i32_1 = arith.constant 0 : i32
    return %c0_i32, %c0_i32_0 : i32, i32
  }
  func.func @transform_5(%arg0: i32) -> (i32, i32, i32) {
    %c0_i32 = arith.constant 0 : i32
    %c0_i32_0 = arith.constant 0 : i32
    %c0_i32_1 = arith.constant 0 : i32
    %c0_i32_2 = arith.constant 0 : i32
    return %c0_i32, %c0_i32_0, %c0_i32_1 : i32, i32, i32
  }
  func.func @transform_6(%arg0: i32) -> (i32, i32) {
    %c0_i32 = arith.constant 0 : i32
    %c0_i32_0 = arith.constant 0 : i32
    %c0_i32_1 = arith.constant 0 : i32
    return %c0_i32, %c0_i32_0 : i32, i32
  }
  func.func @transform_7(%arg0: i32) -> (i32, i32) {
    %c0_i32 = arith.constant 0 : i32
    %c0_i32_0 = arith.constant 0 : i32
    return %arg0, %c0_i32 : i32, i32
  }
}

</mosaic_0001>

<bundles_post_ra>
// kernel: tpu_custom_call.1
= control target key start
LH: loop header
LB: loop body
LE: loop exit
PB: predicated region body
PF: predicated region fallthrough
CT: control target
= control target key end

     0   :  { %v78_v1 = vlaneseq  ;;  %v5069_v3 = vmov 0   ;;  %v3370_v11 = vmov 1966171168   ;;  %s5059_s0 = inlined_call_operand.vmem [shape: bf16[16,128], index: 0, kind: input, shape index: {}]   ;;  %s5060_s1 = inlined_call_operand.vmem [shape: bf16[16,128], index: 1, kind: input, shape index: {}]   ;;  %s5061_s2 = inlined_call_operand.vmem [shape: bf16[16,16,128], index: 2, kind: input, shape index: {}]   ;;  %s5062_s3 = inlined_call_operand.vmem [shape: f32[16,16,1], index: 3, kind: input, shape index: {}]   ;;  %s5063_s4 = inlined_call_operand.vmem [shape: bf16[128,4], index: 4, kind: input, shape index: {}]   ;;  %s5064_s5 = inlined_call_operand.vmem [shape: f32[4,16,32], index: 5, kind: input, shape index: {}]   ;;  %s5065_s6 = inlined_call_operand.vmem [shape: f32[1,32], index: 6, kind: input, shape index: {}]   ;;  %s5066_s7 = inlined_call_operand.hbm [shape: f32[16,32], index: 7, kind: output, shape index: {}]  }
   0x1   :  { %v3241_v0 = vld [vmem:[%s5063_s4] sm:$0xff]   ;;  %v3242_v2 = vld [vmem:[%s5063_s4 + $0x8] sm:$0xff]   ;;  %3180 = vset.pattern.permute.xlu1 %v5069_v3  ;;  %3179 = vset.pattern.permute.xlu0 %v5069_v3  ;;  %v3243_v6 = vld [vmem:[%s5063_s4 + $0x10] sm:$0xff]   ;;  %v76_v12 = vunpack.c.l.s4 %v3370_v11 }
   0x2   :  { %3057 = vmatprep.subr.bf16.mxu0 %v3241_v0  ;;  %3149 = vmatprep.subr.bf16.mxu1 %v3241_v0  ;;  %v79_v4 = vshrl.u32 %v78_v1, 7  ;;  %v1659_v5 = vand.u32 127, %v78_v1  ;;  %v870_v7 = vld [vmem:[%s5062_s3 + $0x10] sm:$0xff]  ;;  %v868_v8 = vld [vmem:[%s5062_s3] sm:$0xff]  ;;  %v871_v10 = vld [vmem:[%s5062_s3 + $0x18] sm:$0xff] }
   0x3   :  { %3058 = vmatpush3.bf16.msra.mxu0 %v3241_v0  ;;  %3157 = vmatpush3.bf16.msra.mxu1 %v3241_v0  ;;  %v869_v14 = vld [vmem:[%s5062_s3 + $0x8] sm:$0xff]  ;;  %v3244_v15 = vld [vmem:[%s5063_s4 + $0x18] sm:$0xff]   ;;  %v77_v16 = vunpack.c.0.s8 %v76_v12  ;;  %v872_v20 = vld [vmem:[%s5062_s3 + $0x20] sm:$0xff] }
   0x4   :  { %3059 = vmatprep.subr.bf16.mxu0 %v3242_v2  ;;  %3150 = vmatprep.subr.bf16.mxu1 %v3242_v2  ;;  %v3434_v9 = vsub.s32 %v1659_v5, %v79_v4  ;;  %v1664_v13 = vadd.s32 4294967288, %v1659_v5  ;;  %v873_v19 = vld [vmem:[%s5062_s3 + $0x28] sm:$0xff]  ;;  %v2952_v21 = vld.sshfl [vmem:[%s5060_s1] sm:$0x33 pattern:$0x75316420] }
   0x5   :  { %912 = vperm.xlu1 %3180, %v870_v7   ;;  %902 = vperm.xlu0 %3179, %v868_v8   ;;  %v80_v18 = vsub.s32 %v77_v16, %v79_v4  ;;  %v3245_v22 = vld [vmem:[%s5063_s4 + $0x20] sm:$0xff]   ;;  %v74_v23 = vcombine.high %v2952_v21, %v2952_v21  ;;  %v3459_v25 = vsub.s32 0, %v79_v4  ;;  %v875_v31 = vld [vmem:[%s5062_s3 + $0x38] sm:$0xff]  ;;  %v874_v32 = vld [vmem:[%s5062_s3 + $0x30] sm:$0xff] }
   0x6   :  { %5083 = vst [vmem:[#allocation5_spill] sm:$0xff] %v3434_v9  ;;  %v3445_v17 = vsub.s32 %v1664_v13, %v79_v4  ;;  %v2953_v26 = vld.sshfl [vmem:[%s5060_s1 + $0x4] sm:$0x33 pattern:$0x75316420]  ;;  %v3246_v35 = vld [vmem:[%s5063_s4 + $0x28] sm:$0xff]  }
   0x7   :  { %3060 = vmatpush3.bf16.msra.mxu0 %v3242_v2  ;;  %3158 = vmatpush3.bf16.msra.mxu1 %v3242_v2  ;;  %v81_v24 = vrot.slane %v2952_v21, %v80_v18  ;;  %v98_v28 = vcombine.high %v2953_v26, %v2953_v26  ;;  %v3464_v29 = vrot.slane %v2953_v26, %v80_v18  ;;  %v877_v47 = vld [vmem:[%s5062_s3 + $0x48] sm:$0xff]  ;;  %v876_v48 = vld [vmem:[%s5062_s3 + $0x40] sm:$0xff]  ;;  %v3247_v52 = vld [vmem:[%s5063_s4 + $0x30] sm:$0xff]  }
   0x8   :  { %3061 = vmatprep.subr.bf16.mxu0 %v3243_v6  ;;  %3151 = vmatprep.subr.bf16.mxu1 %v3243_v6  ;;  %5084 = vst [vmem:[#allocation6_spill] sm:$0xff] %v3445_v17  ;;  %v3472_v33 = vrot.slane %v74_v23, %v80_v18  ;;  %v3512_v56 = vld [vmem:[%s5059_s0] sm:$0xf]  ;;  %v3517_v57 = vld [vmem:[%s5059_s0 + $0x4] sm:$0xf]  ;;  %v879_v5 = vld [vmem:[%s5062_s3 + $0x58] sm:$0xff] }
   0x9   :  { %917 = vperm.xlu1 %3180, %v871_v10   ;;  %907 = vperm.xlu0 %3179, %v869_v14   ;;  %v2954_v27 = vpack.i.b16 %v81_v24, %v81_v24  ;;  %v116_v30 = vunpack.i.h.s16 %v81_v24  ;;  %v3474_v34 = vcombine.high %v81_v24, %v81_v24  ;;  %v3480_v37 = vrot.slane %v98_v28, %v80_v18  ;;  %v33_v62 = vld [vmem:[%s5061_s2] sm:$0xf]  ;;  %v34_v2 = vld [vmem:[%s5061_s2 + $0x4] sm:$0xf]  ;;  %v3248_v10 = vld [vmem:[%s5063_s4 + $0x38] sm:$0xff]  }
   0xa   :  { %v2955_v39 = vpack.i.b16 %v3472_v33, %v3472_v33  ;;  %v3486_v40 = vcombine.high %v3464_v29, %v3464_v29  ;;  %v118_v41 = vunpack.i.h.s16 %v3472_v33  ;;  %v124_v14 = vunpack.i.h.s16 %v3464_v29  ;;  %v35_v23 = vld [vmem:[%s5061_s2 + $0x8] sm:$0xf]  ;;  %v36_v24 = vld [vmem:[%s5061_s2 + $0xc] sm:$0xf]  ;;  %v54_v28 = vld [vmem:[%s5061_s2 + $0x54] sm:$0xf] }
   0xb   :  { %3062 = vmatpush3.bf16.msra.mxu0 %v3243_v6  ;;  %3159 = vmatpush3.bf16.msra.mxu1 %v3243_v6  ;;  %v150_v36 = vrot.slane %v2954_v27, %v3459_v25  ;;  %v132_v38 = vpack.i.b16 %v116_v30, %v116_v30  ;;  %v2956_v42 = vpack.i.b16 %v3474_v34, %v3474_v34  ;;  %v126_v46 = vunpack.i.h.s16 %v3480_v37  ;;  %v878_v6 = vld [vmem:[%s5062_s3 + $0x50] sm:$0xff] }
   0xc   :  { %3063 = vmatprep.subr.bf16.mxu0 %v3244_v15  ;;  %3152 = vmatprep.subr.bf16.mxu1 %v3244_v15  ;;  %v2959_v44 = vpack.i.b16 %v3480_v37, %v3480_v37  ;;  %v158_v49 = vrot.slane %v2955_v39, %v3459_v25  ;;  %v2960_v50 = vpack.i.b16 %v3486_v40, %v3486_v40  ;;  %v128_v26 = vunpack.i.h.s16 %v3486_v40  ;;  %v53_v27 = vld [vmem:[%s5061_s2 + $0x50] sm:$0xf] }
   0xd   :  { %927 = vperm.xlu1 %3180, %v873_v19   ;;  %922 = vperm.xlu0 %3179, %v872_v20   ;;  %v212_v43 = vpack.i.b16 %v150_v36, %v150_v36  ;;  %v154_v45 = vrot.slane %v132_v38, %v3459_v25  ;;  %v134_v51 = vpack.i.b16 %v118_v41, %v118_v41  ;;  %v120_v36 = vunpack.i.h.s16 %v3474_v34 }
   0xe   :  { %v190_v54 = vrot.slane %v2959_v44, %v3459_v25  ;;  %v142_v58 = vpack.i.b16 %v126_v46, %v126_v46  ;;  %v226_v59 = vpack.i.b16 %v158_v49, %v158_v49  ;;  %v198_v60 = vrot.slane %v2960_v50, %v3459_v25  ;;  %v880_v46 = vld [vmem:[%s5062_s3 + $0x60] sm:$0xff] }
   0xf   :  { %3064 = vmatpush3.bf16.msra.mxu0 %v3244_v15  ;;  %3160 = vmatpush3.bf16.msra.mxu1 %v3244_v15  ;;  %v217_v53 = vrot.slane %v212_v43, %v3459_v25  ;;  %v219_v55 = vpack.i.b16 %v154_v45, %v154_v45  ;;  %v3521_v61 = vrot.slane %v134_v51, %v3459_v25 }
  0x10   :  { %3065 = vmatprep.subr.bf16.mxu0 %v3245_v22  ;;  %3153 = vmatprep.subr.bf16.mxu1 %v3245_v22  ;;  %v282_v0 = vpack.i.b16 %v190_v54, %v190_v54  ;;  %v194_v4 = vrot.slane %v142_v58, %v3459_v25  ;;  %v231_v7 = vrot.slane %v226_v59, %v3459_v25  ;;  %v55_v54 = vld [vmem:[%s5061_s2 + $0x58] sm:$0xf] }
  0x11   :  { %937 = vperm.xlu1 %3180, %v875_v31   ;;  %932 = vperm.xlu0 %3179, %v874_v32   ;;  %v2962_v63 = vcombine.low %v217_v53, %v217_v53  ;;  %v224_v1 = vrot.slane %v219_v55, %v3459_v25  ;;  %v296_v8 = vpack.i.b16 %v198_v60, %v198_v60  ;;  %v56_v55 = vld [vmem:[%s5061_s2 + $0x5c] sm:$0xf] }
  0x12   :  { %v287_v13 = vrot.slane %v282_v0, %v3459_v25  ;;  %v289_v16 = vpack.i.b16 %v194_v4, %v194_v4  ;;  %v3545_v18 = vcombine.low %v231_v7, %v231_v7  ;;  %v883_v58 = vld [vmem:[%s5062_s3 + $0x78] sm:$0xff]  ;;  %v37_v7 = vld [vmem:[%s5061_s2 + $0x10] sm:$0xf] }
  0x13   :  { %3066 = vmatpush3.bf16.msra.mxu0 %v3245_v22  ;;  %3161 = vmatpush3.bf16.msra.mxu1 %v3245_v22  ;;  %v387_v11 = vadd.bf16 %v2962_v63, %v3512_v56  ;;  %v388_v12 = vadd.bf16 %v2962_v63, %v3517_v57  ;;  %v2963_v15 = vcombine.low %v224_v1, %v224_v1  ;;  %v882_v63 = vld [vmem:[%s5062_s3 + $0x70] sm:$0xff] }
  0x14   :  { %3067 = vmatprep.subr.bf16.mxu0 %v3246_v35  ;;  %3154 = vmatprep.subr.bf16.mxu1 %v3246_v35  ;;  %v3548_v19 = vrot.slane %v296_v8, %v3459_v25  ;;  %v2972_v22 = vcombine.low %v287_v13, %v287_v13  ;;  %v294_v32 = vrot.slane %v289_v16, %v3459_v25  ;;  %v38_v8 = vld [vmem:[%s5061_s2 + $0x14] sm:$0xf] }
  0x15   :  { %947 = vperm.xlu1 %3180, %v877_v47   ;;  %942 = vperm.xlu0 %3179, %v876_v48   ;;  %v419_v20 = vadd.bf16 %v387_v11, %v33_v62  ;;  %v420_v21 = vadd.bf16 %v388_v12, %v34_v2  ;;  %v389_v30 = vadd.bf16 %v2963_v15, %v3512_v56 }
  0x16   :  { %v390_v31 = vadd.bf16 %v2963_v15, %v3517_v57  ;;  %v407_v41 = vadd.bf16 %v2972_v22, %v3512_v56  ;;  %v408_v43 = vadd.bf16 %v2972_v22, %v3517_v57  ;;  %v2973_v49 = vcombine.low %v294_v32, %v294_v32 }
  0x17   :  { %3068 = vmatpush3.bf16.msra.mxu0 %v3246_v35  ;;  %3162 = vmatpush3.bf16.msra.mxu1 %v3246_v35  ;;  %v881_v35 = vld [vmem:[%s5062_s3 + $0x68] sm:$0xff]  ;;  %vm451_vm0 = vcmp.ge.bf16.partialorder %v419_v20, 0  ;;  %vm452_vm1 = vcmp.ge.bf16.partialorder %v420_v21, 0  ;;  %v483_v38 = vmul.bf16 1045249613, %v419_v20  ;;  %v421_v44 = vadd.bf16 %v389_v30, %v35_v23 }
  0x18   :  { %3069 = vmatprep.subr.bf16.mxu0 %v3247_v52  ;;  %3155 = vmatprep.subr.bf16.mxu1 %v3247_v52  ;;  %v484_v39 = vmul.bf16 1045249613, %v420_v21  ;;  %v422_v45 = vadd.bf16 %v390_v31, %v36_v24  ;;  %v391_v50 = vadd.bf16 %v3545_v18, %v3512_v56  ;;  %v440_v53 = vadd.bf16 %v408_v43, %v54_v28 }
  0x19   :  { %957 = vperm.xlu1 %3180, %v879_v5   ;;  %952 = vperm.xlu0 %3179, %v878_v6   ;;  %v515_v47 = vsel %vm451_vm0, %v419_v20, %v483_v38  ;;  %vm453_vm2 = vcmp.ge.bf16.partialorder %v421_v44, 0  ;;  %v485_v59 = vmul.bf16 1045249613, %v421_v44  ;;  %v409_v62 = vadd.bf16 %v2973_v49, %v3512_v56 }
  0x1a   :  { %v516_v48 = vsel %vm452_vm1, %v420_v21, %v484_v39  ;;  %vm454_vm3 = vcmp.ge.bf16.partialorder %v422_v45, 0  ;;  %v486_v60 = vmul.bf16 1045249613, %v422_v45  ;;  %vm472_vm5 = vcmp.ge.bf16.partialorder %v440_v53, 0 }
  0x1b   :  { %3070 = vmatpush3.bf16.msra.mxu0 %v3247_v52  ;;  %3163 = vmatpush3.bf16.msra.mxu1 %v3247_v52  ;;  %v2978_v51 = vcombine.low %v515_v47, %v516_v48  ;;  %v439_v52 = vadd.bf16 %v407_v41, %v53_v27  ;;  %v504_v1 = vmul.bf16 1045249613, %v440_v53  ;;  %v517_v2 = vsel %vm453_vm2, %v421_v44, %v485_v59 }
  0x1c   :  { %3071 = vmatprep.subr.bf16.mxu0 %v3248_v10  ;;  %3156 = vmatprep.subr.bf16.mxu1 %v3248_v10  ;;  %v518_v4 = vsel %vm454_vm3, %v422_v45, %v486_v60  ;;  %v410_v5 = vadd.bf16 %v2973_v49, %v3517_v57  ;;  %v441_v6 = vadd.bf16 %v409_v62, %v55_v54 }
  0x1d   :  { %967 = vperm.xlu1 %3180, %v881_v35   ;;  %962 = vperm.xlu0 %3179, %v880_v46   ;;  %vm471_vm4 = vcmp.ge.bf16.partialorder %v439_v52, 0  ;;  %v503_v0 = vmul.bf16 1045249613, %v439_v52 }
  0x1e   :  { %3073 = vmatprep.mubr.bf16.mxu0 %v2978_v51 }
  0x1f   :  { %3072 = vmatpush3.bf16.msra.mxu0 %v3248_v10  ;;  %3164 = vmatpush3.bf16.msra.mxu1 %v3248_v10 }
  0x21   :  { %977 = vperm.xlu1 %3180, %v883_v58  }
  0x22   :  { %12 = vsyncpa [#allocation3], 0  ;;  %v535_v10 = vsel %vm471_vm4, %v439_v52, %v503_v0  ;;  %v536_v11 = vsel %vm472_vm5, %v440_v53, %v504_v1  ;;  %v2979_v12 = vcombine.low %v517_v2, %v518_v4  ;;  %v392_v13 = vadd.bf16 %v3545_v18, %v3517_v57  ;;  %v885_v15 = vld [vmem:[%s5062_s3 + $0x88] sm:$0xff]  ;;  %972 = vperm.xlu0 %3179, %v882_v63   ;;  %v57_v24 = vld [vmem:[%s5061_s2 + $0x60] sm:$0xf]  ;;  %s3374_s13 = smov [#allocation2]  }
  0x23   :  { %v2988_v16 = vcombine.low %v535_v10, %v536_v11  ;;  %v442_v20 = vadd.bf16 %v410_v5, %v56_v55  ;;  %vm473_vm6 = vcmp.ge.bf16.partialorder %v441_v6, 0  ;;  %v505_v21 = vmul.bf16 1045249613, %v441_v6  ;;  %v884_v28 = vld [vmem:[%s5062_s3 + $0x80] sm:$0xff]  ;;  %v886_v47 = vld [vmem:[%s5062_s3 + $0x90] sm:$0xff]  ;;  %v889_v60 = vld [vmem:[%s5062_s3 + $0xa8] sm:$0xff] }
  0x24   :  { %3074 = vmatmul.mubr.bf16.vlgmr.msra.gmra.mrb[0].mxu0 %v2979_v12  ;;  %v423_v22 = vadd.bf16 %v391_v50, %v37_v7  ;;  %v424_v23 = vadd.bf16 %v392_v13, %v38_v8  ;;  %v2974_v27 = vcombine.low %v3548_v19, %v3548_v19  ;;  %v233_v18 = vpack.i.b16 %v3521_v61, %v3521_v61  ;;  %v58_v32 = vld [vmem:[%s5061_s2 + $0x64] sm:$0xf]  ;;  %v887_v61 = vld [vmem:[%s5062_s3 + $0x98] sm:$0xff]  ;;  %v59_v12 = vld [vmem:[%s5061_s2 + $0x68] sm:$0xf]  ;;  %s2941_s14 = sshll.u32 %s3374_s13, 4  ;;  %s2942_s14 = int_to_ptr.vmem [resolvable:$true] %s2941_s14 }
  0x25   :  { %3093 = vmatprep.mubr.bf16.mxu1 %v2988_v16  ;;  %vm474_vm7 = vcmp.ge.bf16.partialorder %v442_v20, 0  ;;  %v506_v30 = vmul.bf16 1045249613, %v442_v20  ;;  %v537_v31 = vsel %vm473_vm6, %v441_v6, %v505_v21  ;;  %v144_v35 = vpack.i.b16 %v128_v26, %v128_v26  ;;  %987 = vperm.xlu1 %3180, %v885_v15   ;;  %v39_v52 = vld [vmem:[%s5061_s2 + $0x18] sm:$0xf]  ;;  %v888_v34 = vld [vmem:[%s5062_s3 + $0xa0] sm:$0xff]  ;;  %p3350_p1 = scmp.lt.s32.totalorder %s2942_s14, %s2942_s14 }
  0x26   :  { %vm455_vm8 = vcmp.ge.bf16.partialorder %v423_v22, 0  ;;  %vm456_vm9 = vcmp.ge.bf16.partialorder %v424_v23, 0  ;;  %v487_v19 = vmul.bf16 1045249613, %v423_v22  ;;  %v488_v38 = vmul.bf16 1045249613, %v424_v23  ;;  %982 = vperm.xlu0 %3179, %v884_v28  }
  0x27   :  { %v538_v39 = vsel %vm474_vm7, %v442_v20, %v506_v30  ;;  %v411_v41 = vadd.bf16 %v2974_v27, %v3512_v56  ;;  %v412_v43 = vadd.bf16 %v2974_v27, %v3517_v57  ;;  %v238_v44 = vrot.slane %v233_v18, %v3459_v25  ;;  %v40_v53 = vld [vmem:[%s5061_s2 + $0x1c] sm:$0xf]  ;;  %v60_v13 = vld [vmem:[%s5061_s2 + $0x6c] sm:$0xf]  ;;  %s3345_s15 = scalar_lea.vmem %s2942_s14, 256 }
  0x28   :  { %v2989_v40 = vcombine.low %v537_v31, %v538_v39  ;;  %v519_v45 = vsel %vm455_vm8, %v423_v22, %v487_v19  ;;  %v520_v26 = vsel %vm456_vm9, %v424_v23, %v488_v38  ;;  %v202_v46 = vrot.slane %v144_v35, %v3459_v25  ;;  %v891_v11 = vld [vmem:[%s5062_s3 + $0xb8] sm:$0xff]  ;;  %v890_v22 = vld [vmem:[%s5062_s3 + $0xb0] sm:$0xff]  ;;  %v893_v19 = vld [vmem:[%s5062_s3 + $0xc8] sm:$0xff]  ;;  %p3346_p0 = scmp.ne.s32.totalorder %s2942_s14, %s3345_s15  ;;  %p3351_p2 = scmp.lt.s32.totalorder %s3345_s15, %s3345_s15 }
  0x29   :  { %v2980_v48 = vcombine.low %v519_v45, %v520_v26  ;;  %v443_v49 = vadd.bf16 %v411_v41, %v57_v24  ;;  %v444_v50 = vadd.bf16 %v412_v43, %v58_v32  ;;  %v2965_v51 = vcombine.low %v238_v44, %v238_v44  ;;  %997 = vperm.xlu1 %3180, %v887_v61   ;;  %v41_v43 = vld [vmem:[%s5061_s2 + $0x20] sm:$0xf]  ;;  %v42_v44 = vld [vmem:[%s5061_s2 + $0x24] sm:$0xf] }
  0x2a   :  { %3094 = vmatmul.mubr.bf16.vlgmr.msra.gmra.mrb[0].mxu1 %v2989_v40  ;;  %v303_v54 = vpack.i.b16 %v202_v46, %v202_v46  ;;  %v166_v55 = vrot.slane %v2956_v42, %v3459_v25  ;;  %v114_v58 = vcombine.high %v3480_v37, %v3480_v37  ;;  %v136_v59 = vpack.i.b16 %v120_v36, %v120_v36  ;;  %p3352_p3 = por %p3351_p2, %p3350_p1 }
  0x2b   :  { %3077 = vmatprep.mubr.bf16.mxu0 %v2980_v48  ;;  %vm475_vm10 = vcmp.ge.bf16.partialorder %v443_v49, 0  ;;  %vm476_vm11 = vcmp.ge.bf16.partialorder %v444_v50, 0  ;;  %v507_v62 = vmul.bf16 1045249613, %v443_v49  ;;  %v508_v63 = vmul.bf16 1045249613, %v444_v50  ;;  %992 = vperm.xlu0 %3179, %v886_v47  }
  0x2c   :  { %v393_v0 = vadd.bf16 %v2965_v51, %v3512_v56  ;;  %v394_v42 = vadd.bf16 %v2965_v51, %v3517_v57  ;;  %v308_v37 = vrot.slane %v303_v54, %v3459_v25  ;;  %v240_v1 = vpack.i.b16 %v166_v55, %v166_v55  ;;  %v892_v48 = vld [vmem:[%s5062_s3 + $0xc0] sm:$0xff]  ;;  %v43_v54 = vld [vmem:[%s5061_s2 + $0x28] sm:$0xf]  ;;  %p3353_p4 = pnand %p3352_p3, %p3346_p0 }
  0x2d   :  { %v539_v36 = vsel %vm475_vm10, %v443_v49, %v507_v62  ;;  %v540_v2 = vsel %vm476_vm11, %v444_v50, %v508_v63  ;;  %v2961_v4 = vpack.i.b16 %v114_v58, %v114_v58  ;;  %v170_v5 = vrot.slane %v136_v59, %v3459_v25  ;;  %1007 = vperm.xlu1 %3180, %v889_v60   ;;  %v61_v62 = vld [vmem:[%s5061_s2 + $0x70] sm:$0xf]  ;;  %v62_v63 = vld [vmem:[%s5061_s2 + $0x74] sm:$0xf] }
  0x2e   :  { %v2990_v6 = vcombine.low %v539_v36, %v540_v2  ;;  %v425_v7 = vadd.bf16 %v393_v0, %v39_v52  ;;  %v426_v8 = vadd.bf16 %v394_v42, %v40_v53  ;;  %v2975_v10 = vcombine.low %v308_v37, %v308_v37  ;;  %v44_v0 = vld [vmem:[%s5061_s2 + $0x2c] sm:$0xf]  ;;  %v894_v36 = vld [vmem:[%s5062_s3 + $0xd0] sm:$0xff] }
  0x2f   :  { %v245_v15 = vrot.slane %v240_v1, %v3459_v25  ;;  %v206_v16 = vrot.slane %v2961_v4, %v3459_v25  ;;  %v247_v20 = vpack.i.b16 %v170_v5, %v170_v5  ;;  %v130_v21 = vunpack.i.h.s16 %v114_v58  ;;  %1002 = vperm.xlu0 %3179, %v888_v34   ;;  %v895_v58 = vld [vmem:[%s5062_s3 + $0xd8] sm:$0xff] }
  0x30   :  { %3097 = vmatprep.mubr.bf16.mxu1 %v2990_v6  ;;  %vm457_vm12 = vcmp.ge.bf16.partialorder %v425_v7, 0  ;;  %vm458_vm13 = vcmp.ge.bf16.partialorder %v426_v8, 0  ;;  %v489_v23 = vmul.bf16 1045249613, %v425_v7  ;;  %v490_v24 = vmul.bf16 1045249613, %v426_v8 }
  0x31   :  { %v413_v27 = vadd.bf16 %v2975_v10, %v3512_v56  ;;  %v414_v18 = vadd.bf16 %v2975_v10, %v3517_v57  ;;  %v2966_v28 = vcombine.low %v245_v15, %v245_v15  ;;  %v310_v30 = vpack.i.b16 %v206_v16, %v206_v16  ;;  %1017 = vperm.xlu1 %3180, %v891_v11  }
  0x32   :  { %v521_v31 = vsel %vm457_vm12, %v425_v7, %v489_v23  ;;  %v522_v32 = vsel %vm458_vm13, %v426_v8, %v490_v24  ;;  %v252_v35 = vrot.slane %v247_v20, %v3459_v25  ;;  %v146_v61 = vpack.i.b16 %v130_v21, %v130_v21  ;;  %v896_v23 = vld [vmem:[%s5062_s3 + $0xe0] sm:$0xff] }
  0x33   :  { %v2981_v38 = vcombine.low %v521_v31, %v522_v32  ;;  %v445_v39 = vadd.bf16 %v413_v27, %v59_v12  ;;  %v446_v41 = vadd.bf16 %v414_v18, %v60_v13  ;;  %v395_v40 = vadd.bf16 %v2966_v28, %v3512_v56  ;;  %1012 = vperm.xlu0 %3179, %v890_v22   ;;  %v897_v12 = vld [vmem:[%s5062_s3 + $0xe8] sm:$0xff]  ;;  %v899_v31 = vld [vmem:[%s5062_s3 + $0xf8] sm:$0xff] }
  0x34   :  { %v396_v45 = vadd.bf16 %v2966_v28, %v3517_v57  ;;  %v315_v26 = vrot.slane %v310_v30, %v3459_v25  ;;  %v2967_v46 = vcombine.low %v252_v35, %v252_v35  ;;  %v210_v47 = vrot.slane %v146_v61, %v3459_v25 }
  0x35   :  { %3078 = vmatmul.mubr.bf16.gmra.mrb[4].mxu0 %v2981_v38  ;;  %vm477_vm14 = vcmp.ge.bf16.partialorder %v445_v39, 0  ;;  %vm478_vm15 = vcmp.ge.bf16.partialorder %v446_v41, 0  ;;  %v509_v49 = vmul.bf16 1045249613, %v445_v39  ;;  %v510_v50 = vmul.bf16 1045249613, %v446_v41  ;;  %1027 = vperm.xlu1 %3180, %v893_v19  }
  0x36   :  { %v427_v51 = vadd.bf16 %v395_v40, %v41_v43  ;;  %v428_v52 = vadd.bf16 %v396_v45, %v42_v44  ;;  %v2976_v53 = vcombine.low %v315_v26, %v315_v26  ;;  %v397_v55 = vadd.bf16 %v2967_v46, %v3512_v56  ;;  %v63_v19 = vld [vmem:[%s5061_s2 + $0x78] sm:$0xf]  ;;  %v64_v38 = vld [vmem:[%s5061_s2 + $0x7c] sm:$0xf]  ;;  %v898_v45 = vld [vmem:[%s5062_s3 + $0xf0] sm:$0xff] }
  0x37   :  { %v541_v59 = vsel %vm477_vm14, %v445_v39, %v509_v49  ;;  %v542_v60 = vsel %vm478_vm15, %v446_v41, %v510_v50  ;;  %v398_v42 = vadd.bf16 %v2967_v46, %v3517_v57  ;;  %v317_v37 = vpack.i.b16 %v210_v47, %v210_v47  ;;  %1022 = vperm.xlu0 %3179, %v892_v48  }
  0x38   :  { %v2991_v1 = vcombine.low %v541_v59, %v542_v60  ;;  %vm459_vm0 = vcmp.ge.bf16.partialorder %v427_v51, 0  ;;  %vm460_vm1 = vcmp.ge.bf16.partialorder %v428_v52, 0  ;;  %v491_v34 = vmul.bf16 1045249613, %v427_v51 }
  0x39   :  { %v492_v2 = vmul.bf16 1045249613, %v428_v52  ;;  %v415_v4 = vadd.bf16 %v2976_v53, %v3512_v56  ;;  %v416_v5 = vadd.bf16 %v2976_v53, %v3517_v57  ;;  %v429_v6 = vadd.bf16 %v397_v55, %v43_v54  ;;  %1037 = vperm.xlu1 %3180, %v895_v58  }
  0x3a   :  { %3098 = vmatmul.mubr.bf16.gmra.mrb[4].mxu1 %v2991_v1  ;;  %v523_v7 = vsel %vm459_vm0, %v427_v51, %v491_v34  ;;  %v430_v8 = vadd.bf16 %v398_v42, %v44_v0  ;;  %v322_v10 = vrot.slane %v317_v37, %v3459_v25  ;;  %v90_v11 = vcombine.high %v3472_v33, %v3472_v33  ;;  %v45_v1 = vld [vmem:[%s5061_s2 + $0x30] sm:$0xf]  ;;  %v46_v34 = vld [vmem:[%s5061_s2 + $0x34] sm:$0xf] }
  0x3b   :  { %v524_v13 = vsel %vm460_vm1, %v428_v52, %v492_v2  ;;  %v447_v15 = vadd.bf16 %v415_v4, %v61_v62  ;;  %v448_v16 = vadd.bf16 %v416_v5, %v62_v63  ;;  %vm461_vm2 = vcmp.ge.bf16.partialorder %v429_v6, 0  ;;  %1032 = vperm.xlu0 %3179, %v894_v36  }
  0x3c   :  { %v2982_v20 = vcombine.low %v523_v7, %v524_v13  ;;  %vm462_vm3 = vcmp.ge.bf16.partialorder %v430_v8, 0  ;;  %v493_v21 = vmul.bf16 1045249613, %v429_v6  ;;  %v494_v22 = vmul.bf16 1045249613, %v430_v8 }
  0x3d   :  { %vm479_vm4 = vcmp.ge.bf16.partialorder %v447_v15, 0  ;;  %vm480_vm5 = vcmp.ge.bf16.partialorder %v448_v16, 0  ;;  %v511_v33 = vmul.bf16 1045249613, %v447_v15  ;;  %v512_v24 = vmul.bf16 1045249613, %v448_v16  ;;  %1047 = vperm.xlu1 %3180, %v897_v12  }
  0x3e   :  { %3081 = vmatprep.mubr.bf16.mxu0 %v2982_v20  ;;  %v525_v27 = vsel %vm461_vm2, %v429_v6, %v493_v21  ;;  %v526_v18 = vsel %vm462_vm3, %v430_v8, %v494_v22  ;;  %v2977_v28 = vcombine.low %v322_v10, %v322_v10  ;;  %v2957_v30 = vpack.i.b16 %v90_v11, %v90_v11  ;;  %v47_v7 = vld [vmem:[%s5061_s2 + $0x38] sm:$0xf]  ;;  %v48_v12 = vld [vmem:[%s5061_s2 + $0x3c] sm:$0xf]  ;;  %v51_v22 = vld [vmem:[%s5061_s2 + $0x48] sm:$0xf] }
  0x3f   :  { %v543_v32 = vsel %vm479_vm4, %v447_v15, %v511_v33  ;;  %v544_v35 = vsel %vm480_vm5, %v448_v16, %v512_v24  ;;  %v2983_v61 = vcombine.low %v525_v27, %v526_v18  ;;  %v122_v39 = vunpack.i.h.s16 %v90_v11  ;;  %1042 = vperm.xlu0 %3179, %v896_v23   ;;  %v49_v15 = vld [vmem:[%s5061_s2 + $0x40] sm:$0xf]  ;;  %v50_v16 = vld [vmem:[%s5061_s2 + $0x44] sm:$0xf]  ;;  %v52_v23 = vld [vmem:[%s5061_s2 + $0x4c] sm:$0xf] }
  0x40   :  { %v2992_v41 = vcombine.low %v543_v32, %v544_v35  ;;  %v417_v43 = vadd.bf16 %v2977_v28, %v3512_v56  ;;  %v418_v44 = vadd.bf16 %v2977_v28, %v3517_v57  ;;  %v174_v40 = vrot.slane %v2957_v30, %v3459_v25 }
  0x41   :  { %3082 = vmatmul.mubr.bf16.gmra.mrb[8].mxu0 %v2983_v61  ;;  %v138_v26 = vpack.i.b16 %v122_v39, %v122_v39  ;;  %v2958_v46 = vpack.i.b16 %v3464_v29, %v3464_v29  ;;  %v140_v47 = vpack.i.b16 %v124_v14, %v124_v14  ;;  %1057 = vperm.xlu1 %3180, %v899_v31   ;;  %vm1092_vm0 = vcmask 31744  }
  0x42   :  { %3101 = vmatprep.mubr.bf16.mxu1 %v2992_v41  ;;  %v449_v48 = vadd.bf16 %v417_v43, %v63_v19  ;;  %v450_v49 = vadd.bf16 %v418_v44, %v64_v38  ;;  %v254_v50 = vpack.i.b16 %v174_v40, %v174_v40  ;;  %vm1669_vm1 = vcmask 130112  }
  0x43   :  { %v178_v51 = vrot.slane %v138_v26, %v3459_v25  ;;  %v182_v52 = vrot.slane %v2958_v46, %v3459_v25  ;;  %v186_v53 = vrot.slane %v140_v47, %v3459_v25  ;;  %1052 = vperm.xlu0 %3179, %v898_v45   ;;  %vm1806_vm2 = vcmask 1041409  }
  0x44   :  { %vm481_vm6 = vcmp.ge.bf16.partialorder %v449_v48, 0  ;;  %vm482_vm7 = vcmp.ge.bf16.partialorder %v450_v49, 0  ;;  %v513_v54 = vmul.bf16 1045249613, %v449_v48  ;;  %v514_v55 = vmul.bf16 1045249613, %v450_v49 }
  0x45   :  { %v259_v29 = vrot.slane %v254_v50, %v3459_v25  ;;  %v261_v58 = vpack.i.b16 %v178_v51, %v178_v51  ;;  %v268_v14 = vpack.i.b16 %v182_v52, %v182_v52  ;;  %v275_v59 = vpack.i.b16 %v186_v53, %v186_v53 }
  0x46   :  { %v545_v60 = vsel %vm481_vm6, %v449_v48, %v513_v54  ;;  %v546_v62 = vsel %vm482_vm7, %v450_v49, %v514_v55  ;;  %vm1808_vm3 = vcmask 1042434   ;;  %vm1810_vm4 = vcmask 1043459  }
  0x47   :  { %v2993_v63 = vcombine.low %v545_v60, %v546_v62  ;;  %v2968_v0 = vcombine.low %v259_v29, %v259_v29  ;;  %v266_v42 = vrot.slane %v261_v58, %v3459_v25  ;;  %v273_v37 = vrot.slane %v268_v14, %v3459_v25 }
  0x48   :  { %v280_v36 = vrot.slane %v275_v59, %v3459_v25  ;;  %vm1812_vm5 = vcmask 1044484   ;;  %vm1814_vm6 = vcmask 1045509   ;;  %vm1816_vm7 = vcmask 1046534  }
  0x49   :  { %3102 = vmatmul.mubr.bf16.gmra.mrb[8].mxu1 %v2993_v63  ;;  %v399_v2 = vadd.bf16 %v2968_v0, %v3512_v56  ;;  %v400_v4 = vadd.bf16 %v2968_v0, %v3517_v57  ;;  %v2969_v5 = vcombine.low %v266_v42, %v266_v42  ;;  %v2970_v6 = vcombine.low %v273_v37, %v273_v37 }
  0x4a   :  { %v2971_v8 = vcombine.low %v280_v36, %v280_v36  ;;  %v5067_v36 = vmov 1  }
  0x4b   :  { %v431_v10 = vadd.bf16 %v399_v2, %v45_v1  ;;  %v432_v11 = vadd.bf16 %v400_v4, %v46_v34  ;;  %v401_v25 = vadd.bf16 %v2969_v5, %v3512_v56  ;;  %v402_v13 = vadd.bf16 %v2969_v5, %v3517_v57  ;;  %3181 = vset.pattern.permute.xlu1 %v5067_v36 }
  0x4c   :  { %v403_v20 = vadd.bf16 %v2970_v6, %v3512_v56  ;;  %v404_v21 = vadd.bf16 %v2970_v6, %v3517_v57  ;;  %v405_v33 = vadd.bf16 %v2971_v8, %v3512_v56  ;;  %v406_v24 = vadd.bf16 %v2971_v8, %v3517_v57 }
  0x4d   :  { %vm463_vm8 = vcmp.ge.bf16.partialorder %v431_v10, 0  ;;  %vm464_vm9 = vcmp.ge.bf16.partialorder %v432_v11, 0  ;;  %v495_v27 = vmul.bf16 1045249613, %v431_v10  ;;  %v496_v18 = vmul.bf16 1045249613, %v432_v11 }
  0x4e   :  { %v433_v28 = vadd.bf16 %v401_v25, %v47_v7  ;;  %v434_v30 = vadd.bf16 %v402_v13, %v48_v12  ;;  %v435_v31 = vadd.bf16 %v403_v20, %v49_v15  ;;  %v436_v32 = vadd.bf16 %v404_v21, %v50_v16 }
  0x4f   :  { %v527_v35 = vsel %vm463_vm8, %v431_v10, %v495_v27  ;;  %v528_v61 = vsel %vm464_vm9, %v432_v11, %v496_v18  ;;  %v437_v19 = vadd.bf16 %v405_v33, %v51_v22  ;;  %v438_v38 = vadd.bf16 %v406_v24, %v52_v23 }
  0x50   :  { %v2984_v39 = vcombine.low %v527_v35, %v528_v61  ;;  %vm465_vm10 = vcmp.ge.bf16.partialorder %v433_v28, 0  ;;  %vm466_vm11 = vcmp.ge.bf16.partialorder %v434_v30, 0  ;;  %v497_v41 = vmul.bf16 1045249613, %v433_v28 }
  0x51   :  { %v498_v43 = vmul.bf16 1045249613, %v434_v30  ;;  %vm467_vm12 = vcmp.ge.bf16.partialorder %v435_v31, 0  ;;  %vm468_vm13 = vcmp.ge.bf16.partialorder %v436_v32, 0  ;;  %v499_v56 = vmul.bf16 1045249613, %v435_v31 }
  0x52   :  { %3085 = vmatprep.mubr.bf16.mxu0 %v2984_v39  ;;  %v529_v57 = vsel %vm465_vm10, %v433_v28, %v497_v41  ;;  %v500_v44 = vmul.bf16 1045249613, %v436_v32  ;;  %v501_v26 = vmul.bf16 1045249613, %v437_v19  ;;  %v502_v46 = vmul.bf16 1045249613, %v438_v38 }
  0x53   :  { %v530_v40 = vsel %vm466_vm11, %v434_v30, %v498_v43  ;;  %v531_v45 = vsel %vm467_vm12, %v435_v31, %v499_v56  ;;  %vm469_vm14 = vcmp.ge.bf16.partialorder %v437_v19, 0  ;;  %vm470_vm15 = vcmp.ge.bf16.partialorder %v438_v38, 0 }
  0x54   :  { %v2985_v47 = vcombine.low %v529_v57, %v530_v40  ;;  %v532_v48 = vsel %vm468_vm13, %v436_v32, %v500_v44  ;;  %v533_v50 = vsel %vm469_vm14, %v437_v19, %v501_v26  ;;  %v534_v51 = vsel %vm470_vm15, %v438_v38, %v502_v46 }
  0x55   :  { %v2986_v49 = vcombine.low %v531_v45, %v532_v48  ;;  %v2987_v52 = vcombine.low %v533_v50, %v534_v51  ;;  %vm1818_vm8 = vcmask 1047559   ;;  %vm1827_vm9 = vcmask 130048  }
  0x56   :  { %3086 = vmatmul.mubr.bf16.gmra.mrb[12].mxu0 %v2985_v47  ;;  %vm2933_vm11 = vcmask 261120  }
  0x57   :  { %3089 = vmatprep.mubr.bf16.mxu0 %v2986_v49 }
  0x5e   :  { %3090 = vmatmul.mubr.bf16.gmra.mrb[16].mxu0 %v2987_v52 }
  0x84   :  { %v903_v53 = vpop.permute.xlu0 %902  ;;  %v913_v54 = vpop.permute.xlu1 %912 }
  0x88   :  { %v908_v55 = vpop.permute.xlu0 %907  ;;  %v918_v29 = vpop.permute.xlu1 %917 }
  0x8c   :  { %v3776_v58 = vpop.permute.xlu0 %922  ;;  %v3778_v14 = vpop.permute.xlu1 %927 }
  0x90   :  { %v3780_v59 = vpop.permute.xlu0 %932  ;;  %v3782_v60 = vpop.permute.xlu1 %937 }
  0x94   :  { %v3784_v62 = vpop.permute.xlu0 %942  ;;  %v3786_v63 = vpop.permute.xlu1 %947 }
  0x98   :  { %v3788_v0 = vpop.permute.xlu0 %952  ;;  %v3790_v42 = vpop.permute.xlu1 %957 }
  0x9c   :  { %v3792_v37 = vpop.permute.xlu0 %962  ;;  %v3794_v1 = vpop.permute.xlu1 %967 }
  0xa0   :  { %v3799_v2 = vpop.permute.xlu1 %977 }
  0xa1   :  { %v3796_v34 = vpop.permute.xlu0 %972 }
  0xa4   :  { %v3803_v5 = vpop.permute.xlu1 %987 }
  0xa5   :  { %v3801_v4 = vpop.permute.xlu0 %982 }
  0xa8   :  { %v3807_v7 = vpop.permute.xlu1 %997 }
  0xaa   :  { %v3805_v6 = vpop.permute.xlu0 %992 }
  0xac   :  { %v1008_v25 = vpop.permute.xlu1 %1007 }
  0xae   :  { %v1003_v8 = vpop.permute.xlu0 %1002 }
  0xb0   :  { %v1018_v35 = vpop.permute.xlu1 %1017 }
  0xb2   :  { %v1013_v33 = vpop.permute.xlu0 %1012 }
  0xf7   :  { %v3075_v10 = vpop.f32.mrb[0].mxu0 }
  0xf8   :  { %v3809_v11 = vadd.f32 %v3075_v10, %v913_v54  ;;  %v741_v12 = vpop.f32.mrb[1].mxu0 }
  0xf9   :  { %v3811_v13 = vadd.f32 %v903_v53, %v741_v12  ;;  %v3076_v15 = vpop.f32.mrb[2].mxu0 }
  0xfa   :  { %v1063_v16 = vadd.f32 %v3076_v15, %v918_v29  ;;  %v744_v20 = vpop.f32.mrb[3].mxu0  ;;  %v1102_v22 = vsel %vm1092_vm0, %v3809_v11, -inf }
  0xfb   :  { %v3813_v21 = vadd.f32 %v908_v55, %v744_v20  ;;  %v1093_v27 = vsel %vm1092_vm0, %v3811_v13, -inf  ;;  %v1023_v55 = vpop.permute.xlu0 %1022 }
  0xfc   :  { %v1103_v23 = vsel %vm1092_vm0, %v1063_v16, -inf }
  0xfd   :  { %v3095_v24 = vpop.f32.mrb[0].mxu1  ;;  %v1104_v18 = vmax.f32 %v1102_v22, %v1103_v23  ;;  %v1094_v28 = vsel %vm1092_vm0, %v3813_v21, -inf }
  0xfe   :  { %v3822_v30 = vadd.f32 %v3095_v24, %v1013_v33  ;;  %v821_v31 = vpop.f32.mrb[1].mxu1  ;;  %v1095_v32 = vmax.f32 %v1093_v27, %v1094_v28 }
  0xff   :  { %v3824_v61 = vadd.f32 %v1003_v8, %v821_v31  ;;  %v1105_v19 = vrot.slane %v1104_v18, 4  ;;  %v3096_v38 = vpop.f32.mrb[2].mxu1 }
 0x100   :  { %v3826_v39 = vadd.f32 %v3096_v38, %v1018_v35  ;;  %v1096_v41 = vrot.slane %v1095_v32, 4  ;;  %v824_v43 = vpop.f32.mrb[3].mxu1  ;;  %v1192_v44 = vsel %vm1092_vm0, %v3822_v30, -inf }
 0x101   :  { %v1106_v56 = vmax.f32 %v1104_v18, %v1105_v19  ;;  %v3828_v57 = vadd.f32 %v1008_v25, %v824_v43  ;;  %v1183_v26 = vsel %vm1092_vm0, %v3824_v61, -inf  ;;  %v1028_v19 = vpop.permute.xlu1 %1027 }
 0x102   :  { %v1193_v40 = vsel %vm1092_vm0, %v3826_v39, -inf  ;;  %v1097_v45 = vmax.f32 %v1095_v32, %v1096_v41 }
 0x103   :  { %v1107_v46 = vrot.slane %v1106_v56, 2  ;;  %v1194_v47 = vmax.f32 %v1192_v44, %v1193_v40  ;;  %v1184_v48 = vsel %vm1092_vm0, %v3828_v57, -inf }
 0x104   :  { %v1098_v49 = vrot.slane %v1097_v45, 2  ;;  %v1185_v50 = vmax.f32 %v1183_v26, %v1184_v48 }
 0x105   :  { %v1108_v51 = vmax.f32 %v1106_v56, %v1107_v46  ;;  %v1195_v52 = vrot.slane %v1194_v47, 4  ;;  %v1033_v56 = vpop.permute.xlu0 %1032 }
 0x106   :  { %v1099_v53 = vmax.f32 %v1097_v45, %v1098_v49  ;;  %v1186_v54 = vrot.slane %v1185_v50, 4 }
 0x107   :  { %v1109_v29 = vrot.slane %v1108_v51, 1  ;;  %v1196_v8 = vmax.f32 %v1194_v47, %v1195_v52 }
 0x108   :  { %v1100_v10 = vrot.slane %v1099_v53, 1  ;;  %v1187_v12 = vmax.f32 %v1185_v50, %v1186_v54  ;;  %v3079_v25 = vpop.f32.mrb[4].mxu0 }
 0x109   :  { %v1110_v15 = vmax.f32 %v1108_v51, %v1109_v29  ;;  %v1197_v20 = vrot.slane %v1196_v8, 2  ;;  %v3839_v22 = vadd.f32 %v3079_v25, %v3780_v59  ;;  %v757_v23 = vpop.f32.mrb[5].mxu0 }
 0x10a   :  { %v1101_v33 = vmax.f32 %v1099_v53, %v1100_v10  ;;  %v1188_v24 = vrot.slane %v1187_v12, 2  ;;  %v3080_v27 = vpop.f32.mrb[6].mxu0  ;;  %v3843_v32 = vadd.f32 %v3776_v58, %v757_v23  ;;  %v1038_v10 = vpop.permute.xlu1 %1037 }
 0x10b   :  { %v1239_v18 = vsub.f32 %v3809_v11, %v1110_v15  ;;  %v1240_v28 = vsub.f32 %v1063_v16, %v1110_v15  ;;  %v1198_v31 = vmax.f32 %v1196_v8, %v1197_v20  ;;  %v760_v35 = vpop.f32.mrb[7].mxu0  ;;  %v1120_v59 = vsel %vm1092_vm0, %v3839_v22, -inf }
 0x10c   :  { %v1237_v38 = vsub.f32 %v3811_v13, %v1101_v33  ;;  %v1238_v41 = vsub.f32 %v3813_v21, %v1101_v33  ;;  %v1189_v43 = vmax.f32 %v1187_v12, %v1188_v24  ;;  %v3850_v16 = vadd.f32 %v3080_v27, %v3782_v60 }
 0x10d   :  { %v1273_v44 = vmul.f32 1.442695, %v1239_v18  ;;  %v1275_v40 = vmul.f32 1.442695, %v1240_v28  ;;  %v1199_v45 = vrot.slane %v1198_v31, 1  ;;  %v3099_v11 = vpop.f32.mrb[4].mxu1  ;;  %v3869_v33 = vadd.f32 %v3778_v14, %v760_v35 }
 0x10e   :  { %v1269_v58 = vmul.f32 1.442695, %v1237_v38  ;;  %v1271_v26 = vmul.f32 1.442695, %v1238_v41  ;;  %v1190_v46 = vrot.slane %v1189_v43, 1  ;;  %v3852_v47 = vadd.f32 %v3099_v11, %v1033_v56  ;;  %v837_v13 = vpop.f32.mrb[5].mxu1 }
 0x10f   :  { %3249 = vpow2.f32 %v1273_v44  ;;  %v1200_v21 = vmax.f32 %v1198_v31, %v1199_v45  ;;  %v1111_v48 = vsel %vm1092_vm0, %v3843_v32, -inf  ;;  %v1121_v49 = vsel %vm1092_vm0, %v3850_v16, -inf  ;;  %v3100_v50 = vpop.f32.mrb[6].mxu1  ;;  %v3887_v44 = vpop.permute.xlu0 %1042 }
 0x110   :  { %3251 = vpow2.f32 %v1275_v40  ;;  %v1191_v51 = vmax.f32 %v1189_v43, %v1190_v46  ;;  %v3858_v52 = vadd.f32 %v1023_v55, %v837_v13  ;;  %v1122_v60 = vmax.f32 %v1120_v59, %v1121_v49  ;;  %v840_v53 = vpop.f32.mrb[7].mxu1 }
 0x111   :  { %v1259_v54 = vsub.f32 %v3822_v30, %v1200_v21  ;;  %v1260_v29 = vsub.f32 %v3826_v39, %v1200_v21  ;;  %3253 = vpow2.f32 %v1269_v58  ;;  %v1210_v8 = vsel %vm1092_vm0, %v3852_v47, -inf }
 0x112   :  { %3255 = vpow2.f32 %v1271_v26  ;;  %v1257_v12 = vsub.f32 %v3824_v61, %v1191_v51  ;;  %v1258_v25 = vsub.f32 %v3828_v57, %v1191_v51  ;;  %v1123_v15 = vrot.slane %v1122_v60, 4 }
 0x113   :  { %v1313_v20 = vmul.f32 1.442695, %v1259_v54  ;;  %v1315_v55 = vmul.f32 1.442695, %v1260_v29  ;;  %v3866_v23 = vadd.f32 %v3100_v50, %v1038_v10  ;;  %v3871_v27 = vadd.f32 %v1028_v19, %v840_v53 }
 0x114   :  { %v1309_v30 = vmul.f32 1.442695, %v1257_v12  ;;  %v1311_v39 = vmul.f32 1.442695, %v1258_v25  ;;  %v1124_v24 = vmax.f32 %v1122_v60, %v1123_v15  ;;  %v3083_v18 = vpop.f32.mrb[8].mxu0  ;;  %v1112_v57 = vsel %vm1092_vm0, %v3869_v33, -inf }
 0x115   :  { %3257 = vpow2.f32 %v1313_v20  ;;  %v1211_v61 = vsel %vm1092_vm0, %v3866_v23, -inf  ;;  %v3878_v28 = vadd.f32 %v3083_v18, %v3788_v0  ;;  %v773_v31 = vpop.f32.mrb[9].mxu0  ;;  %v1113_v38 = vmax.f32 %v1111_v48, %v1112_v57 }
 0x116   :  { %3259 = vpow2.f32 %v1315_v55  ;;  %v1125_v14 = vrot.slane %v1124_v24, 2  ;;  %v1212_v35 = vmax.f32 %v1210_v8, %v1211_v61  ;;  %v3084_v41 = vpop.f32.mrb[10].mxu0  ;;  %v1201_v19 = vsel %vm1092_vm0, %v3858_v52, -inf }
 0x117   :  { %3261 = vpow2.f32 %v1309_v30  ;;  %v1202_v43 = vsel %vm1092_vm0, %v3871_v27, -inf  ;;  %v3885_v59 = vadd.f32 %v3784_v62, %v773_v31  ;;  %v776_v56 = vpop.f32.mrb[11].mxu0  ;;  %v1114_v45 = vrot.slane %v1113_v38, 4 }
 0x118   :  { %3263 = vpow2.f32 %v1311_v39  ;;  %v1126_v0 = vmax.f32 %v1124_v24, %v1125_v14  ;;  %v1213_v40 = vrot.slane %v1212_v35, 4  ;;  %v1203_v58 = vmax.f32 %v1201_v19, %v1202_v43  ;;  %v1053_v24 = vpop.permute.xlu0 %1052 }
 0x119   :  { %v3889_v11 = vpop.eup %3249  ;;  %v3893_v26 = vsel %vm1092_vm0, %v3878_v28, -inf  ;;  %v3896_v46 = vadd.f32 %v3084_v41, %v3790_v42  ;;  %v3899_v62 = vadd.f32 %v3786_v63, %v776_v56  ;;  %v1115_v50 = vmax.f32 %v1113_v38, %v1114_v45 }
 0x11a   :  { %v3901_v13 = vpop.eup %3251  ;;  %v1342_v21 = vsel %vm1092_vm0, %v3889_v11, 0.0  ;;  %v1127_v48 = vrot.slane %v1126_v0, 1  ;;  %v1214_v49 = vmax.f32 %v1212_v35, %v1213_v40  ;;  %v1204_v53 = vrot.slane %v1203_v58, 4 }
 0x11b   :  { %v3905_v51 = vpop.eup %3253  ;;  %v1343_v60 = vsel %vm1092_vm0, %v3901_v13, 0.0  ;;  %v3911_v42 = vsel %vm1092_vm0, %v3885_v59, -inf  ;;  %v3915_v63 = vsel %vm1092_vm0, %v3896_v46, -inf  ;;  %v1116_v20 = vrot.slane %v1115_v50, 2 }
 0x11c   :  { %5085 = vst [vmem:[#allocation7_spill] sm:$0xff] %v3905_v51  ;;  %v3917_v54 = vpop.eup %3255  ;;  %v1344_v29 = vadd.f32 %v1343_v60, %v1342_v21  ;;  %v1333_v8 = vsel %vm1092_vm0, %v3905_v51, 0.0  ;;  %v1128_v10 = vmax.f32 %v1126_v0, %v1127_v48  ;;  %v1215_v12 = vrot.slane %v1214_v49, 2  ;;  %v3103_v25 = vpop.f32.mrb[8].mxu1 }
 0x11d   :  { %v1334_v15 = vsel %vm1092_vm0, %v3917_v54, 0.0  ;;  %v1205_v55 = vmax.f32 %v1203_v58, %v1204_v53  ;;  %v853_v30 = vpop.f32.mrb[9].mxu1  ;;  %v3925_v39 = vsel %vm1092_vm0, %v3899_v62, -inf  ;;  %v1117_v41 = vmax.f32 %v1115_v50, %v1116_v20  ;;  %v1048_v53 = vpop.permute.xlu1 %1047 }
 0x11e   :  { %v1345_v18 = vrot.slane %v1344_v29, 4  ;;  %v1335_v61 = vadd.f32 %v1334_v15, %v1333_v8  ;;  %v1243_v57 = vsub.f32 %v3839_v22, %v1128_v10  ;;  %v1244_v31 = vsub.f32 %v3850_v16, %v1128_v10  ;;  %v3104_v14 = vpop.f32.mrb[10].mxu1 }
 0x11f   :  { %v3929_v35 = vpop.eup %3257  ;;  %v1216_v38 = vmax.f32 %v1214_v49, %v1215_v12  ;;  %v1206_v19 = vrot.slane %v1205_v55, 2  ;;  %v3931_v43 = vadd.f32 %v3103_v25, %v1053_v24  ;;  %v3933_v56 = vpop.f32.mrb[11].mxu1  ;;  %v1118_v50 = vrot.slane %v1117_v41, 1 }
 0x120   :  { %v3935_v0 = vpop.eup %3259  ;;  %v1346_v40 = vadd.f32 %v1345_v18, %v1344_v29  ;;  %v1432_v45 = vsel %vm1092_vm0, %v3929_v35, 0.0  ;;  %v1336_v58 = vrot.slane %v1335_v61, 4  ;;  %v1281_v22 = vmul.f32 1.442695, %v1243_v57 }
 0x121   :  { %v3939_v21 = vpop.eup %3261  ;;  %v1433_v16 = vsel %vm1092_vm0, %v3935_v0, 0.0  ;;  %v1283_v48 = vmul.f32 1.442695, %v1244_v31  ;;  %v1217_v49 = vrot.slane %v1216_v38, 1  ;;  %v1119_v20 = vmax.f32 %v1117_v41, %v1118_v50  ;;  %v1058_v50 = vpop.permute.xlu1 %1057 }
 0x122   :  { %v3943_v60 = vpop.eup %3263  ;;  %v1347_v8 = vrot.slane %v1346_v40, 2  ;;  %v1434_v10 = vadd.f32 %v1433_v16, %v1432_v45  ;;  %v1337_v12 = vadd.f32 %v1336_v58, %v1335_v61  ;;  %v1423_v29 = vsel %vm1092_vm0, %v3939_v21, 0.0 }
 0x123   :  { %5086 = vst [vmem:[#allocation8_spill] sm:$0xff] %v3943_v60  ;;  %v1424_v25 = vsel %vm1092_vm0, %v3943_v60, 0.0  ;;  %3265 = vpow2.f32 %v1281_v22  ;;  %v1218_v15 = vmax.f32 %v1216_v38, %v1217_v49  ;;  %v1228_v31 = vsel %vm1092_vm0, %v3931_v43, -inf }
 0x124   :  { %v3949_v24 = vadd.f32 %v1347_v8, %v1346_v40  ;;  %v1435_v18 = vrot.slane %v1434_v10, 4  ;;  %v1425_v57 = vadd.f32 %v1424_v25, %v1423_v29  ;;  %3267 = vpow2.f32 %v1283_v48 }
 0x125   :  { %v1263_v45 = vsub.f32 %v3852_v47, %v1218_v15  ;;  %v1264_v61 = vsub.f32 %v3866_v23, %v1218_v15  ;;  %v1241_v58 = vsub.f32 %v3843_v32, %v1119_v20  ;;  %v1338_v36 = vrot.slane %v1337_v12, 2 }
 0x126   :  { %v1436_v16 = vadd.f32 %v1435_v18, %v1434_v10  ;;  %v1426_v3 = vrot.slane %v1425_v57, 4  ;;  %v1242_v38 = vsub.f32 %v3869_v33, %v1119_v20  ;;  %v1207_v49 = vmax.f32 %v1205_v55, %v1206_v19 }
 0x127   :  { %v1321_v41 = vmul.f32 1.442695, %v1263_v45  ;;  %v1323_v40 = vmul.f32 1.442695, %v1264_v61  ;;  %v1277_v22 = vmul.f32 1.442695, %v1241_v58  ;;  %v3958_v48 = vadd.f32 %v3887_v44, %v853_v30 }
 0x128   :  { %v1437_v8 = vrot.slane %v1436_v16, 2  ;;  %v1427_v29 = vadd.f32 %v1426_v3, %v1425_v57  ;;  %v1279_v25 = vmul.f32 1.442695, %v1242_v38  ;;  %v1208_v47 = vrot.slane %v1207_v49, 1 }
 0x129   :  { %3269 = vpow2.f32 %v1321_v41  ;;  %v1140_v32 = vmax.f32 %v3893_v26, %v3915_v63  ;;  %v3962_v23 = vadd.f32 %v3104_v14, %v1058_v50  ;;  %v3087_v10 = vpop.f32.mrb[12].mxu0  ;;  %v3966_v15 = vadd.f32 %v1338_v36, %v1337_v12 }
 0x12a   :  { %v3964_v33 = vadd.f32 %v1437_v8, %v1436_v16  ;;  %v1428_v55 = vrot.slane %v1427_v29, 2  ;;  %3271 = vpow2.f32 %v1323_v40  ;;  %v789_v19 = vpop.f32.mrb[13].mxu0  ;;  %v1209_v3 = vmax.f32 %v1207_v49, %v1208_v47 }
 0x12b   :  { %3273 = vpow2.f32 %v1277_v22  ;;  %v1141_v20 = vrot.slane %v1140_v32, 4  ;;  %v1229_v44 = vsel %vm1092_vm0, %v3962_v23, -inf  ;;  %v3088_v30 = vpop.f32.mrb[14].mxu0  ;;  %v1219_v26 = vsel %vm1092_vm0, %v3958_v48, -inf }
 0x12c   :  { %3275 = vpow2.f32 %v1279_v25  ;;  %v1230_v63 = vmax.f32 %v1228_v31, %v1229_v44  ;;  %v1131_v14 = vmax.f32 %v3911_v42, %v3925_v39  ;;  %v3974_v36 = vpop.f32.mrb[15].mxu0  ;;  %v1261_v18 = vsub.f32 %v3858_v52, %v1209_v3 }
 0x12d   :  { %v3976_v12 = vpop.eup %3265  ;;  %v1262_v57 = vsub.f32 %v3871_v27, %v1209_v3  ;;  %v1142_v45 = vmax.f32 %v1140_v32, %v1141_v20  ;;  %v3981_v61 = vadd.f32 %v1048_v53, %v3933_v56  ;;  %v3986_v38 = vadd.f32 %v3087_v10, %v3796_v34 }
 0x12e   :  { %v1360_v58 = vsel %vm1092_vm0, %v3976_v12, 0.0  ;;  %v1231_v16 = vrot.slane %v1230_v63, 4  ;;  %v1132_v31 = vrot.slane %v1131_v14, 4  ;;  %v3988_v42 = vpop.eup %3267  ;;  %v1317_v39 = vmul.f32 1.442695, %v1261_v18 }
 0x12f   :  { %v1319_v41 = vmul.f32 1.442695, %v1262_v57  ;;  %v1143_v40 = vrot.slane %v1142_v45, 2  ;;  %v1220_v52 = vsel %vm1092_vm0, %v3981_v61, -inf  ;;  %v1361_v27 = vsel %vm1092_vm0, %v3988_v42, 0.0 }
 0x130   :  { %v1232_v56 = vmax.f32 %v1230_v63, %v1231_v16  ;;  %v1133_v53 = vmax.f32 %v1131_v14, %v1132_v31  ;;  %v1221_v22 = vmax.f32 %v1219_v26, %v1220_v52  ;;  %v3994_v49 = vadd.f32 %v1428_v55, %v1427_v29 }
 0x131   :  { %v1362_v50 = vadd.f32 %v1361_v27, %v1360_v58  ;;  %3277 = vpow2.f32 %v1317_v39  ;;  %v1144_v34 = vmax.f32 %v1142_v45, %v1143_v40  ;;  %v3996_v8 = vpop.f32.mrb[16].mxu0  ;;  %v1156_v26 = vsel %vm1092_vm0, %v3986_v38, -inf }
 0x132   :  { %3279 = vpow2.f32 %v1319_v41  ;;  %v1233_v25 = vrot.slane %v1232_v56, 2  ;;  %v1134_v47 = vrot.slane %v1133_v53, 2  ;;  %v1222_v32 = vrot.slane %v1221_v22, 4  ;;  %v3998_v10 = vpop.f32.mrb[17].mxu0 }
 0x133   :  { %v4000_v3 = vpop.eup %3269  ;;  %v1363_v20 = vrot.slane %v1362_v50, 4  ;;  %v1145_v44 = vrot.slane %v1144_v34, 1  ;;  %v4005_v29 = vadd.f32 %v3792_v37, %v789_v19  ;;  %v4007_v55 = vpop.f32.mrb[18].mxu0  ;;  %v4014_v45 = vadd.f32 %v3088_v30, %v3799_v2 }
 0x134   :  { %v4009_v63 = vpop.eup %3271  ;;  %v1450_v14 = vsel %vm1092_vm0, %v4000_v3, 0.0  ;;  %v1234_v18 = vmax.f32 %v1232_v56, %v1233_v25  ;;  %v1135_v57 = vmax.f32 %v1133_v53, %v1134_v47  ;;  %v4016_v58 = vpop.f32.mrb[19].mxu0  ;;  %v1223_v39 = vmax.f32 %v1221_v22, %v1222_v32 }
 0x135   :  { %v4018_v16 = vpop.eup %3273  ;;  %v1364_v31 = vadd.f32 %v1363_v20, %v1362_v50  ;;  %v1451_v37 = vsel %vm1092_vm0, %v4009_v63, 0.0  ;;  %v1146_v19 = vmax.f32 %v1144_v34, %v1145_v44  ;;  %v1147_v50 = vsel %vm1092_vm0, %v4005_v29, -inf }
 0x136   :  { %v4022_v41 = vpop.eup %3275  ;;  %v1452_v40 = vadd.f32 %v1451_v37, %v1450_v14  ;;  %v1351_v52 = vsel %vm1092_vm0, %v4018_v16, 0.0  ;;  %v1235_v27 = vrot.slane %v1234_v18, 1  ;;  %v1136_v56 = vrot.slane %v1135_v57, 1 }
 0x137   :  { %v1352_v2 = vsel %vm1092_vm0, %v4022_v41, 0.0  ;;  %v1247_v30 = vsub.f32 %v3878_v28, %v1146_v19  ;;  %v1248_v53 = vsub.f32 %v3896_v46, %v1146_v19  ;;  %v1365_v32 = vrot.slane %v1364_v31, 2 }
 0x138   :  { %v1453_v34 = vrot.slane %v1452_v40, 4  ;;  %v1353_v22 = vadd.f32 %v1352_v2, %v1351_v52  ;;  %v1236_v25 = vmax.f32 %v1234_v18, %v1235_v27  ;;  %v1137_v47 = vmax.f32 %v1135_v57, %v1136_v56 }
 0x139   :  { %v1289_v20 = vmul.f32 1.442695, %v1247_v30  ;;  %v1291_v44 = vmul.f32 1.442695, %v1248_v53  ;;  %v1224_v14 = vrot.slane %v1223_v39, 2  ;;  %v4044_v30 = vadd.f32 %v1365_v32, %v1364_v31 }
 0x13a   :  { %v1454_v37 = vadd.f32 %v1453_v34, %v1452_v40  ;;  %v1354_v17 = vrot.slane %v1353_v22, 4  ;;  %v1267_v9 = vsub.f32 %v3931_v43, %v1236_v25  ;;  %v1268_v60 = vsub.f32 %v3962_v23, %v1236_v25 }
 0x13b   :  { %v4034_v28 = vpop.eup %3277  ;;  %3281 = vpow2.f32 %v1289_v20  ;;  %v1245_v46 = vsub.f32 %v3885_v59, %v1137_v47  ;;  %v1246_v19 = vsub.f32 %v3899_v62, %v1137_v47  ;;  %v1225_v52 = vmax.f32 %v1223_v39, %v1224_v14 }
 0x13c   :  { %v4038_v18 = vpop.eup %3279  ;;  %v1455_v57 = vrot.slane %v1454_v37, 2  ;;  %v1355_v27 = vadd.f32 %v1354_v17, %v1353_v22  ;;  %v1441_v40 = vsel %vm1092_vm0, %v4034_v28, 0.0  ;;  %3283 = vpow2.f32 %v1291_v44 }
 0x13d   :  { %v1442_v43 = vsel %vm1092_vm0, %v4038_v18, 0.0  ;;  %v1329_v23 = vmul.f32 1.442695, %v1267_v9  ;;  %v1331_v56 = vmul.f32 1.442695, %v1268_v60  ;;  %v1226_v2 = vrot.slane %v1225_v52, 1 }
 0x13e   :  { %v4046_v59 = vadd.f32 %v1455_v57, %v1454_v37  ;;  %v1443_v62 = vadd.f32 %v1442_v43, %v1441_v40  ;;  %v1285_v39 = vmul.f32 1.442695, %v1245_v46  ;;  %v1287_v53 = vmul.f32 1.442695, %v1246_v19 }
 0x13f   :  { %3285 = vpow2.f32 %v1329_v23  ;;  %v1227_v34 = vmax.f32 %v1225_v52, %v1226_v2  ;;  %v1157_v17 = vsel %vm1092_vm0, %v4014_v45, -inf  ;;  %v1356_v22 = vrot.slane %v1355_v27, 2 }
 0x140   :  { %v1444_v25 = vrot.slane %v1443_v62, 4  ;;  %3287 = vpow2.f32 %v1331_v56  ;;  %v1158_v47 = vmax.f32 %v1156_v26, %v1157_v17  ;;  %v4054_v31 = vadd.f32 %v3794_v1, %v3974_v36 }
 0x141   :  { %3289 = vpow2.f32 %v1285_v39  ;;  %v1265_v9 = vsub.f32 %v3958_v48, %v1227_v34  ;;  %v1266_v60 = vsub.f32 %v3981_v61, %v1227_v34  ;;  %v4058_v44 = vadd.f32 %v3996_v8, %v3805_v6 }
 0x142   :  { %v1445_v32 = vadd.f32 %v1444_v25, %v1443_v62  ;;  %3291 = vpow2.f32 %v1287_v53  ;;  %v1159_v20 = vrot.slane %v1158_v47, 4  ;;  %v1148_v26 = vsel %vm1092_vm0, %v4054_v31, -inf }
 0x143   :  { %v1325_v14 = vmul.f32 1.442695, %v1265_v9  ;;  %v1327_v37 = vmul.f32 1.442695, %v1266_v60  ;;  %v4064_v48 = vadd.f32 %v3801_v4, %v3998_v10  ;;  %v4066_v61 = vadd.f32 %v1356_v22, %v1355_v27 }
 0x144   :  { %v1446_v1 = vrot.slane %v1445_v32, 2  ;;  %v1160_v36 = vmax.f32 %v1158_v47, %v1159_v20  ;;  %v1149_v46 = vmax.f32 %v1147_v50, %v1148_v26  ;;  %v1174_v6 = vsel %vm1092_vm0, %v4058_v44, -inf }
 0x145   :  { %v4068_v19 = vpop.eup %3281  ;;  %3293 = vpow2.f32 %v1325_v14  ;;  %v4074_v8 = vadd.f32 %v4007_v55, %v3807_v7  ;;  %v4078_v52 = vadd.f32 %v3803_v5, %v4016_v58  ;;  %v1165_v57 = vsel %vm1092_vm0, %v4064_v48, -inf }
 0x146   :  { %v4080_v4 = vpop.eup %3283  ;;  %v1378_v10 = vsel %vm1092_vm0, %v4068_v19, 0.0  ;;  %3295 = vpow2.f32 %v1327_v37  ;;  %v1161_v50 = vrot.slane %v1160_v36, 2  ;;  %v1150_v40 = vrot.slane %v1149_v46, 4 }
 0x147   :  { %v1379_v27 = vsel %vm1092_vm0, %v4080_v4, 0.0  ;;  %v1175_v7 = vsel %vm1092_vm0, %v4074_v8, -inf  ;;  %v1166_v5 = vsel %vm1092_vm0, %v4078_v52, -inf  ;;  %v4094_v2 = vadd.f32 %v1446_v1, %v1445_v32 }
 0x148   :  { %v1380_v55 = vadd.f32 %v1379_v27, %v1378_v10  ;;  %v1162_v58 = vmax.f32 %v1160_v36, %v1161_v50  ;;  %v1176_v43 = vmax.f32 %v1174_v6, %v1175_v7  ;;  %v1167_v23 = vmax.f32 %v1165_v57, %v1166_v5 }
 0x149   :  { %v4092_v56 = vpop.eup %3285  ;;  %v1151_v62 = vmax.f32 %v1149_v46, %v1150_v40  ;;  %v1439_v39 = vrot.slane %v3964_v33, 1  ;;  %v1349_v53 = vrot.slane %v3949_v24, 1  ;;  %v1340_v14 = vrot.slane %v3966_v15, 1 }
 0x14a   :  { %v4098_v34 = vpop.eup %3287  ;;  %v1381_v17 = vrot.slane %v1380_v55, 4  ;;  %v1468_v22 = vsel %vm1092_vm0, %v4092_v56, 0.0  ;;  %v1163_v25 = vrot.slane %v1162_v58, 1  ;;  %v1177_v47 = vrot.slane %v1176_v43, 4 }
 0x14b   :  { %5087 = vst [vmem:[#allocation9_spill] sm:$0xff] %v4098_v34  ;;  %v4102_v9 = vpop.eup %3289  ;;  %v1469_v60 = vsel %vm1092_vm0, %v4098_v34, 0.0  ;;  %v1152_v32 = vrot.slane %v1151_v62, 2  ;;  %v1168_v20 = vrot.slane %v1167_v23, 4  ;;  %v1440_v5 = vadd.f32 %v1439_v39, %v3964_v33 }
 0x14c   :  { %v4107_v37 = vpop.eup %3291  ;;  %v1382_v26 = vadd.f32 %v1381_v17, %v1380_v55  ;;  %v1470_v1 = vadd.f32 %v1469_v60, %v1468_v22  ;;  %v1369_v36 = vsel %vm1092_vm0, %v4102_v9, 0.0  ;;  %v1164_v46 = vmax.f32 %v1162_v58, %v1163_v25 }
 0x14d   :  { %5088 = vst [vmem:[#allocation10_spill] sm:$0xff] %v4107_v37  ;;  %v1370_v6 = vsel %vm1092_vm0, %v4107_v37, 0.0  ;;  %v1153_v10 = vmax.f32 %v1151_v62, %v1152_v32  ;;  %v1178_v50 = vmax.f32 %v1176_v43, %v1177_v47  ;;  %v1169_v57 = vmax.f32 %v1167_v23, %v1168_v20 }
 0x14e   :  { %v1471_v27 = vrot.slane %v1470_v1, 4  ;;  %v1371_v40 = vadd.f32 %v1370_v6, %v1369_v36  ;;  %v1251_v7 = vsub.f32 %v3986_v38, %v1164_v46  ;;  %v1252_v55 = vsub.f32 %v4014_v45, %v1164_v46 }
 0x14f   :  { %v4115_v51 = vpop.eup %3293  ;;  %v1154_v17 = vrot.slane %v1153_v10, 1  ;;  %v1179_v22 = vrot.slane %v1178_v50, 2  ;;  %v1170_v60 = vrot.slane %v1169_v57, 2  ;;  %v1383_v25 = vrot.slane %v1382_v26, 2 }
 0x150   :  { %5089 = vst [vmem:[#allocation11_spill] sm:$0xff] %v4115_v51  ;;  %v4118_v58 = vpop.eup %3295  ;;  %v1472_v34 = vadd.f32 %v1471_v27, %v1470_v1  ;;  %v1372_v62 = vrot.slane %v1371_v40, 4  ;;  %v1459_v43 = vsel %vm1092_vm0, %v4115_v51, 0.0  ;;  %v1297_v23 = vmul.f32 1.442695, %v1251_v7 }
 0x151   :  { %5090 = vst [vmem:[#allocation12_spill] sm:$0xff] %v4118_v58  ;;  %v1460_v38 = vsel %vm1092_vm0, %v4118_v58, 0.0  ;;  %v1299_v33 = vmul.f32 1.442695, %v1252_v55  ;;  %v1155_v39 = vmax.f32 %v1153_v10, %v1154_v17  ;;  %v1180_v20 = vmax.f32 %v1178_v50, %v1179_v22 }
 0x152   :  { %v1473_v47 = vrot.slane %v1472_v34, 2  ;;  %v1373_v32 = vadd.f32 %v1372_v62, %v1371_v40  ;;  %v1461_v45 = vadd.f32 %v1460_v38, %v1459_v43  ;;  %3297 = vpow2.f32 %v1297_v23 }
 0x153   :  { %v1249_v36 = vsub.f32 %v4005_v29, %v1155_v39  ;;  %v1250_v46 = vsub.f32 %v4054_v31, %v1155_v39  ;;  %v1171_v1 = vmax.f32 %v1169_v57, %v1170_v60  ;;  %v1384_v6 = vadd.f32 %v1383_v25, %v1382_v26 }
 0x154   :  { %v4126_v27 = vadd.f32 %v1473_v47, %v1472_v34  ;;  %v1462_v51 = vrot.slane %v1461_v45, 4  ;;  %3299 = vpow2.f32 %v1299_v33  ;;  %v1181_v7 = vrot.slane %v1180_v20, 1 }
 0x155   :  { %v1293_v37 = vmul.f32 1.442695, %v1249_v36  ;;  %v1295_v58 = vmul.f32 1.442695, %v1250_v46  ;;  %v1172_v55 = vrot.slane %v1171_v1, 1  ;;  %v1374_v10 = vrot.slane %v1373_v32, 2 }
 0x156   :  { %v1463_v17 = vadd.f32 %v1462_v51, %v1461_v45  ;;  %3301 = vrcp.f32 %v1440_v5  ;;  %v1350_v50 = vadd.f32 %v1349_v53, %v3949_v24  ;;  %v1182_v40 = vmax.f32 %v1180_v20, %v1181_v7 }
 0x157   :  { %3303 = vpow2.f32 %v1293_v37  ;;  %v1173_v29 = vmax.f32 %v1171_v1, %v1172_v55  ;;  %v1341_v31 = vadd.f32 %v1340_v14, %v3966_v15  ;;  %v1430_v34 = vrot.slane %v3994_v49, 1 }
 0x158   :  { %v1464_v57 = vrot.slane %v1463_v17, 2  ;;  %3305 = vpow2.f32 %v1295_v58  ;;  %v1367_v26 = vrot.slane %v4044_v30, 1  ;;  %v1255_v22 = vsub.f32 %v4058_v44, %v1182_v40 }
 0x159   :  { %v1256_v60 = vsub.f32 %v4074_v8, %v1182_v40  ;;  %v1253_v51 = vsub.f32 %v4064_v48, %v1173_v29  ;;  %v1254_v5 = vsub.f32 %v4078_v52, %v1173_v29  ;;  %v1375_v24 = vadd.f32 %v1374_v10, %v1373_v32 }
 0x15a   :  { %v1465_v53 = vadd.f32 %v1464_v57, %v1463_v17  ;;  %3307 = vrcp.f32 %v1350_v50  ;;  %v1431_v37 = vadd.f32 %v1430_v34, %v3994_v49  ;;  %v1305_v15 = vmul.f32 1.442695, %v1255_v22 }
 0x15b   :  { %v1307_v14 = vmul.f32 1.442695, %v1256_v60  ;;  %v1301_v58 = vmul.f32 1.442695, %v1253_v51  ;;  %3309 = vrcp.f32 %v1341_v31  ;;  %v1303_v25 = vmul.f32 1.442695, %v1254_v5 }
 0x15c   :  { %3311 = vrcp.f32 %v1431_v37  ;;  %v1457_v62 = vrot.slane %v4046_v59, 1  ;;  %v1358_v44 = vrot.slane %v4066_v61, 1  ;;  %v4139_v8 = vpop.eup %3297  ;;  %v1368_v48 = vadd.f32 %v1367_v26, %v4044_v30 }
 0x15d   :  { %3313 = vpow2.f32 %v1305_v15  ;;  %v1448_v52 = vrot.slane %v4094_v2, 1  ;;  %v1385_v43 = vrot.slane %v1384_v6, 1  ;;  %v1396_v49 = vsel %vm1092_vm0, %v4139_v8, 0.0 }
 0x15e   :  { %v4143_v38 = vpop.eup %3299  ;;  %3315 = vpow2.f32 %v1307_v14  ;;  %v1458_v23 = vadd.f32 %v1457_v62, %v4046_v59  ;;  %v1475_v33 = vrot.slane %v4126_v27, 1  ;;  %v1359_v47 = vadd.f32 %v1358_v44, %v4066_v61 }
 0x15f   :  { %v1397_v39 = vsel %vm1092_vm0, %v4143_v38, 0.0  ;;  %3317 = vpow2.f32 %v1301_v58  ;;  %v1449_v30 = vadd.f32 %v1448_v52, %v4094_v2  ;;  %v1386_v20 = vadd.f32 %v1385_v43, %v1384_v6 }
 0x160   :  { %v3302_v32 = vpop.eup %3301  ;;  %v1398_v45 = vadd.f32 %v1397_v39, %v1396_v49  ;;  %3319 = vpow2.f32 %v1303_v25  ;;  %v1376_v36 = vrot.slane %v1375_v24, 1  ;;  %v1466_v7 = vrot.slane %v1465_v53, 1 }
 0x161   :  { %v4153_v46 = vpop.eup %3303  ;;  %v4156_v1 = vmul.f32 %v3302_v32, %v3929_v35  ;;  %v4159_v59 = vmul.f32 %v3302_v32, %v3935_v0  ;;  %3321 = vrcp.f32 %v1368_v48  ;;  %v1476_v35 = vadd.f32 %v1475_v33, %v4126_v27 }
 0x162   :  { %v4161_v55 = vpop.eup %3305  ;;  %v1399_v61 = vrot.slane %v1398_v45, 4  ;;  %v1387_v2 = vsel %vm1092_vm0, %v4153_v46, 0.0  ;;  %3323 = vrcp.f32 %v1458_v23  ;;  %v1377_v50 = vadd.f32 %v1376_v36, %v1375_v24 }
 0x163   :  { %v1388_v6 = vsel %vm1092_vm0, %v4161_v55, 0.0  ;;  %1974 = vperm.xlu0 %3179, %v4156_v1   ;;  %3325 = vrcp.f32 %v1359_v47  ;;  %v1467_v57 = vadd.f32 %v1466_v7, %v1465_v53  ;;  %v5079_v60 = vmov 3  }
 0x164   :  { %v3308_v10 = vpop.eup %3307  ;;  %v1400_v0 = vadd.f32 %v1399_v61, %v1398_v45  ;;  %v1389_v17 = vadd.f32 %v1388_v6, %v1387_v2  ;;  %3327 = vrcp.f32 %v1449_v30  ;;  %v5091_v39 = vmov 0  }
 0x165   :  { %v4169_v40 = vpop.eup %3309  ;;  %v4172_v29 = vmul.f32 %v3308_v10, %v3889_v11  ;;  %v4175_v31 = vmul.f32 %v3308_v10, %v3901_v13  ;;  %3329 = vrcp.f32 %v1386_v20 }
 0x166   :  { %v4177_v34 = vpop.eup %3311  ;;  %v1401_v26 = vrot.slane %v1400_v0, 2  ;;  %v1390_v22 = vrot.slane %v1389_v17, 4  ;;  %3331 = vrcp.f32 %v1476_v35  ;;  %v4201_v48 = vmul.f32 %v4169_v40, %v3917_v54 }
 0x167   :  { %v4179_v27 = vpop.eup %3313  ;;  %1569 = vperm.xlu1 %3181, %v4172_v29   ;;  %3185 = vset.pattern.permute.xlu0 %v5079_v60  ;;  %3333 = vrcp.f32 %v1377_v50  ;;  %v4205_v52 = vmul.f32 %v4177_v34, %v3939_v21 }
 0x168   :  { %v4183_v51 = vpop.eup %3315  ;;  %v1402_v11 = vadd.f32 %v1401_v26, %v1400_v0  ;;  %v1391_v5 = vadd.f32 %v1390_v22, %v1389_v17  ;;  %v1414_v13 = vsel %vm1092_vm0, %v4179_v27, 0.0  ;;  %2648 = vperm.xlu0 %3185, %v4156_v1   ;;  %3335 = vrcp.f32 %v1467_v57 }
 0x169   :  { %v4188_v24 = vpop.eup %3317  ;;  %v1415_v53 = vsel %vm1092_vm0, %v4183_v51, 0.0 }
 0x16a   :  { %v4192_v37 = vpop.eup %3319  ;;  %v1392_v15 = vrot.slane %v1391_v5, 2  ;;  %v1416_v14 = vadd.f32 %v1415_v53, %v1414_v13  ;;  %v1405_v58 = vsel %vm1092_vm0, %v4188_v24, 0.0  ;;  %v1403_v25 = vrot.slane %v1402_v11, 1 }
 0x16b   :  { %v3322_v62 = vpop.eup %3321  ;;  %v1406_v44 = vsel %vm1092_vm0, %v4192_v37, 0.0  ;;  %1629 = vperm.xlu1 %3181, %v4156_v1  }
 0x16c   :  { %v3324_v43 = vpop.eup %3323  ;;  %v1393_v49 = vadd.f32 %v1392_v15, %v1391_v5  ;;  %v1417_v23 = vrot.slane %v1416_v14, 4  ;;  %v1407_v33 = vadd.f32 %v1406_v44, %v1405_v58  ;;  %3188 = vset.pattern.permute.xlu0 %v5091_v39  ;;  %v4209_v47 = vmul.f32 %v3322_v62, %v3976_v12 }
 0x16d   :  { %v3326_v30 = vpop.eup %3325  ;;  %1911 = vperm.xlu0 %3188, %v4201_v48   ;;  %v4213_v32 = vmul.f32 %v3324_v43, %v4000_v3  ;;  %v1404_v54 = vadd.f32 %v1403_v25, %v1402_v11  ;;  %v4216_v45 = vmul.f32 %v3322_v62, %v3988_v42  ;;  %v4219_v21 = vmul.f32 %v3324_v43, %v4009_v63  ;;  %v5093_v11 = vld [vmem:[#allocation9_spill] sm:$0xff] }
 0x16e   :  { %v3328_v20 = vpop.eup %3327  ;;  %v1418_v36 = vadd.f32 %v1417_v23, %v1416_v14  ;;  %v1408_v7 = vrot.slane %v1407_v33, 4  ;;  %v4222_v61 = vmul.f32 %v3326_v30, %v4018_v16  ;;  %v1394_v12 = vrot.slane %v1393_v49, 1 }
 0x16f   :  { %v3330_v2 = vpop.eup %3329  ;;  %3182 = vset.pattern.permute.xlu1 %v5091_v39  ;;  %v4226_v3 = vmul.f32 %v3328_v20, %v4034_v28  ;;  %3337 = vrcp.f32 %v1404_v54  ;;  %v4229_v42 = vmul.f32 %v3326_v30, %v4022_v41  ;;  %v4232_v63 = vmul.f32 %v3328_v20, %v4038_v18 }
 0x170   :  { %v1419_v6 = vrot.slane %v1418_v36, 2  ;;  %v1409_v35 = vadd.f32 %v1408_v7, %v1407_v33  ;;  %1914 = vperm.xlu1 %3182, %v4172_v29   ;;  %v4236_v16 = vmul.f32 %v3330_v2, %v4068_v19  ;;  %v1395_v10 = vadd.f32 %v1394_v12, %v1393_v49  ;;  %v3332_v0 = vpop.eup %3331  ;;  %v5092_v19 = vld [vmem:[#allocation10_spill] sm:$0xff] }
 0x171   :  { %1968 = vperm.xlu0 %3188, %v4205_v52   ;;  %v4240_v28 = vmul.f32 %v3330_v2, %v4080_v4  ;;  %v3334_v17 = vpop.eup %3333  ;;  %v4243_v18 = vmul.f32 %v3332_v0, %v4092_v56  ;;  %v4252_v5 = vmul.f32 %v3332_v0, %v5093_v11  ;;  %v5094_v4 = vld [vmem:[#allocation11_spill] sm:$0xff]  ;;  %v5095_v56 = vld [vmem:[#allocation12_spill] sm:$0xff]  ;;  %v5081_v23 = vmov 2  }
 0x172   :  { %v1420_v41 = vadd.f32 %v1419_v6, %v1418_v36  ;;  %v1410_v50 = vrot.slane %v1409_v35, 2  ;;  %3339 = vrcp.f32 %v1395_v10  ;;  %v3336_v57 = vpop.eup %3335  ;;  %v4246_v26 = vmul.f32 %v3334_v17, %v4102_v9 }
 0x173   :  { %v4249_v22 = vmul.f32 %v3334_v17, %v5092_v19  ;;  %v4256_v53 = vmul.f32 %v3336_v57, %v5094_v4  ;;  %v4259_v14 = vmul.f32 %v3336_v57, %v5095_v56 }
 0x174   :  { %v1411_v13 = vadd.f32 %v1410_v50, %v1409_v35  ;;  %1917 = vperm.xlu1 %3182, %v4175_v31   ;;  %v1421_v15 = vrot.slane %v1420_v41, 1 }
 0x175   :  { %3191 = vset.pattern.permute.xlu0 %v5079_v60 }
 0x176   :  { %2585 = vperm.xlu0 %3191, %v4201_v48   ;;  %v1422_v9 = vadd.f32 %v1421_v15, %v1420_v41  ;;  %v1412_v58 = vrot.slane %v1411_v13, 1 }
 0x178   :  { %1977 = vperm.xlu1 %3182, %v4159_v59   ;;  %3341 = vrcp.f32 %v1422_v9  ;;  %v1413_v25 = vadd.f32 %v1412_v58, %v1411_v13 }
 0x179   :  { %v3338_v62 = vpop.eup %3337 }
 0x17a   :  { %2642 = vperm.xlu0 %3191, %v4205_v52   ;;  %v4266_v44 = vmul.f32 %v3338_v62, %v4139_v8  ;;  %v4269_v43 = vmul.f32 %v3338_v62, %v4143_v38  ;;  %3343 = vrcp.f32 %v1413_v25 }
 0x17c   :  { %v3340_v49 = vpop.eup %3339  ;;  %3183 = vset.pattern.permute.xlu1 %v5081_v23 }
 0x17d   :  { %2250 = vperm.xlu1 %3183, %v4172_v29   ;;  %v4274_v33 = vmul.f32 %v3340_v49, %v4153_v46  ;;  %v4277_v30 = vmul.f32 %v3340_v49, %v4161_v55 }
 0x17e   :  { %3193 = vset.pattern.permute.xlu0 %v5091_v39 }
 0x17f   :  { %1926 = vperm.xlu0 %3193, %v4209_v47  }
 0x181   :  { %2310 = vperm.xlu1 %3183, %v4156_v1   ;;  %v5096_v1 = vmov 1  }
 0x182   :  { %v3342_v8 = vpop.eup %3341 }
 0x183   :  { %1986 = vperm.xlu0 %3193, %v4213_v32   ;;  %v4284_v38 = vmul.f32 %v3342_v8, %v4179_v27  ;;  %v4287_v54 = vmul.f32 %v3342_v8, %v4183_v51  ;;  %v5098_v51 = vld [vmem:[#allocation8_spill] sm:$0xff] }
 0x184   :  { %v3344_v46 = vpop.eup %3343 }
 0x185   :  { %3184 = vset.pattern.permute.xlu1 %v5079_v60  ;;  %v4291_v55 = vmul.f32 %v3344_v46, %v4192_v37  ;;  %v4294_v20 = vmul.f32 %v3344_v46, %v4188_v24  ;;  %v4318_v24 = vmul.f32 %v4177_v34, %v5098_v51 }
 0x186   :  { %2588 = vperm.xlu1 %3184, %v4172_v29   ;;  %v5097_v29 = vld [vmem:[#allocation7_spill] sm:$0xff] }
 0x187   :  { %3196 = vset.pattern.permute.xlu0 %v5079_v60  ;;  %v4311_v27 = vmul.f32 %v4169_v40, %v5097_v29 }
 0x188   :  { %2600 = vperm.xlu0 %3196, %v4209_v47  }
 0x18a   :  { %2591 = vperm.xlu1 %3184, %v4175_v31  }
 0x18c   :  { %3199 = vset.pattern.permute.xlu0 %v5091_v39 }
 0x18d   :  { %1920 = vperm.xlu0 %3199, %v4222_v61  }
 0x18e   :  { %2651 = vperm.xlu1 %3184, %v4159_v59  }
 0x191   :  { %1980 = vperm.xlu0 %3199, %v4226_v3  }
 0x192   :  { %3186 = vset.pattern.permute.xlu1 %v5096_v1 }
 0x193   :  { %1566 = vperm.xlu1 %3186, %v4201_v48  }
 0x195   :  { %3202 = vset.pattern.permute.xlu0 %v5079_v60 }
 0x196   :  { %2594 = vperm.xlu0 %3202, %v4222_v61  }
 0x197   :  { %1623 = vperm.xlu1 %3186, %v4205_v52  }
 0x19a   :  { %2654 = vperm.xlu0 %3202, %v4226_v3  }
 0x19b   :  { %3187 = vset.pattern.permute.xlu1 %v5091_v39 }
 0x19c   :  { %1908 = vperm.xlu1 %3187, %v4311_v27  }
 0x19e   :  { %3205 = vset.pattern.permute.xlu0 %v5091_v39 }
 0x19f   :  { %1938 = vperm.xlu0 %3205, %v4236_v16  }
 0x1a0   :  { %1971 = vperm.xlu1 %3187, %v4318_v24  }
 0x1a3   :  { %1998 = vperm.xlu0 %3205, %v4243_v18  }
 0x1a4   :  { %3189 = vset.pattern.permute.xlu1 %v5081_v23 }
 0x1a5   :  { %2247 = vperm.xlu1 %3189, %v4201_v48  }
 0x1a7   :  { %3208 = vset.pattern.permute.xlu0 %v5079_v60 }
 0x1a8   :  { %2612 = vperm.xlu0 %3208, %v4236_v16  }
 0x1a9   :  { %2304 = vperm.xlu1 %3189, %v4205_v52  }
 0x1ac   :  { %3211 = vset.pattern.permute.xlu0 %v5091_v39 }
 0x1ad   :  { %3190 = vset.pattern.permute.xlu1 %v5079_v60  ;;  %1932 = vperm.xlu0 %3211, %v4246_v26  }
 0x1ae   :  { %2582 = vperm.xlu1 %3190, %v4311_v27  }
 0x1b1   :  { %1992 = vperm.xlu0 %3211, %v4256_v53  }
 0x1b2   :  { %2645 = vperm.xlu1 %3190, %v4318_v24  }
 0x1b5   :  { %3214 = vset.pattern.permute.xlu0 %v5079_v60 }
 0x1b6   :  { %3192 = vset.pattern.permute.xlu1 %v5096_v1  ;;  %2606 = vperm.xlu0 %3214, %v4246_v26  }
 0x1b7   :  { %1581 = vperm.xlu1 %3192, %v4209_v47  }
 0x1ba   :  { %3217 = vset.pattern.permute.xlu0 %v5091_v39 }
 0x1bb   :  { %1641 = vperm.xlu1 %3192, %v4213_v32   ;;  %1950 = vperm.xlu0 %3217, %v4266_v44  }
 0x1bf   :  { %3194 = vset.pattern.permute.xlu1 %v5091_v39  ;;  %1944 = vperm.xlu0 %3217, %v4274_v33  }
 0x1c0   :  { %1929 = vperm.xlu1 %3194, %v4216_v45  }
 0x1c3   :  { %3223 = vset.pattern.permute.xlu0 %v5079_v60 }
 0x1c4   :  { %1989 = vperm.xlu1 %3194, %v4219_v21   ;;  %2618 = vperm.xlu0 %3223, %v4274_v33  }
 0x1c8   :  { %3195 = vset.pattern.permute.xlu1 %v5081_v23  ;;  %3225 = vset.pattern.permute.xlu0 %v5091_v39 }
 0x1c9   :  { %2262 = vperm.xlu1 %3195, %v4209_v47   ;;  %1962 = vperm.xlu0 %3225, %v4284_v38  }
 0x1cd   :  { %2322 = vperm.xlu1 %3195, %v4213_v32   ;;  %3228 = vset.pattern.permute.xlu0 %v5079_v60 }
 0x1ce   :  { %2636 = vperm.xlu0 %3228, %v4284_v38  }
 0x1d1   :  { %3197 = vset.pattern.permute.xlu1 %v5079_v60 }
 0x1d2   :  { %2603 = vperm.xlu1 %3197, %v4216_v45   ;;  %2660 = vperm.xlu0 %3228, %v4213_v32  }
 0x1d6   :  { %3198 = vset.pattern.permute.xlu1 %v5096_v1  ;;  %3232 = vset.pattern.permute.xlu0 %v5096_v1 }
 0x1d7   :  { %1575 = vperm.xlu1 %3198, %v4222_v61   ;;  %1563 = vperm.xlu0 %3232, %v4311_v27  }
 0x1db   :  { %1635 = vperm.xlu1 %3198, %v4226_v3   ;;  %1572 = vperm.xlu0 %3232, %v4175_v31  }
 0x1df   :  { %3200 = vset.pattern.permute.xlu1 %v5091_v39  ;;  %1578 = vperm.xlu0 %3232, %v4229_v42  }
 0x1e0   :  { %1923 = vperm.xlu1 %3200, %v4229_v42  }
 0x1e2   :  { %v4367_v40 = vpop.permute.xlu0 %1974 }
 0x1e3   :  { %1584 = vperm.xlu0 %3232, %v4216_v45  }
 0x1e4   :  { %1983 = vperm.xlu1 %3200, %v4232_v63  }
 0x1e6   :  { %v4371_v34 = vpop.permute.xlu1 %1569 }
 0x1e7   :  { %v4373_v37 = vpop.permute.xlu0 %2648  ;;  %1590 = vperm.xlu0 %3232, %v4249_v22  }
 0x1e8   :  { %5099 = vst [vmem:[#allocation10_spill] sm:$0xff] %v4373_v37  ;;  %3201 = vset.pattern.permute.xlu1 %v5081_v23 }
 0x1e9   :  { %2256 = vperm.xlu1 %3201, %v4222_v61  }
 0x1ea   :  { %v4378_v48 = vpop.permute.xlu1 %1629 }
 0x1eb   :  { %1596 = vperm.xlu0 %3232, %v4240_v28  }
 0x1ec   :  { %v4381_v52 = vpop.permute.xlu0 %1911 }
 0x1ed   :  { %2316 = vperm.xlu1 %3201, %v4226_v3  }
 0x1ef   :  { %v4384_v47 = vpop.permute.xlu1 %1914  ;;  %1602 = vperm.xlu0 %3232, %v4277_v30  }
 0x1f0   :  { %v4387_v32 = vpop.permute.xlu0 %1968 }
 0x1f1   :  { %3203 = vset.pattern.permute.xlu1 %v5079_v60 }
 0x1f2   :  { %2597 = vperm.xlu1 %3203, %v4229_v42  }
 0x1f3   :  { %v4391_v36 = vpop.permute.xlu1 %1917  ;;  %1608 = vperm.xlu0 %3232, %v4269_v43  }
 0x1f5   :  { %v4394_v7 = vpop.permute.xlu0 %2585 }
 0x1f6   :  { %2657 = vperm.xlu1 %3203, %v4232_v63  }
 0x1f7   :  { %v4397_v61 = vpop.permute.xlu1 %1977  ;;  %1620 = vperm.xlu0 %3232, %v4287_v54  }
 0x1f9   :  { %v4400_v12 = vpop.permute.xlu0 %2642 }
 0x1fa   :  { %5100 = vst [vmem:[#allocation9_spill] sm:$0xff] %v4400_v12  ;;  %3204 = vset.pattern.permute.xlu1 %v5096_v1 }
 0x1fb   :  { %1593 = vperm.xlu1 %3204, %v4236_v16   ;;  %1626 = vperm.xlu0 %3232, %v4318_v24  }
 0x1fc   :  { %v4405_v2 = vpop.permute.xlu1 %2250 }
 0x1fe   :  { %v4407_v3 = vpop.permute.xlu0 %1926 }
 0x1ff   :  { %1653 = vperm.xlu1 %3204, %v4243_v18   ;;  %1632 = vperm.xlu0 %3232, %v4159_v59  }
 0x200   :  { %v4411_v6 = vpop.permute.xlu1 %2310 }
 0x201   :  { %5101 = vst [vmem:[#allocation11_spill] sm:$0xff] %v4411_v6 }
 0x202   :  { %v4413_v35 = vpop.permute.xlu0 %1986 }
 0x203   :  { %5102 = vst [vmem:[#allocation12_spill] sm:$0xff] %v4413_v35  ;;  %3206 = vset.pattern.permute.xlu1 %v5091_v39  ;;  %1638 = vperm.xlu0 %3232, %v4232_v63  }
 0x204   :  { %1941 = vperm.xlu1 %3206, %v4240_v28  }
 0x205   :  { %v4418_v10 = vpop.permute.xlu1 %2588 }
 0x207   :  { %v4420_v0 = vpop.permute.xlu0 %2600  ;;  %1644 = vperm.xlu0 %3232, %v4219_v21  }
 0x208   :  { %2001 = vperm.xlu1 %3206, %v4252_v5  }
 0x209   :  { %v4424_v17 = vpop.permute.xlu1 %2591 }
 0x20b   :  { %1650 = vperm.xlu0 %3232, %v4259_v14  }
 0x20c   :  { %3207 = vset.pattern.permute.xlu1 %v5081_v23  ;;  %v4428_v41 = vpop.permute.xlu0 %1920 }
 0x20d   :  { %v4430_v50 = vpop.permute.xlu1 %2651  ;;  %2274 = vperm.xlu1 %3207, %v4236_v16  }
 0x20e   :  { %5103 = vst [vmem:[#allocation7_spill] sm:$0xff] %v4430_v50 }
 0x20f   :  { %1656 = vperm.xlu0 %3232, %v4252_v5  }
 0x210   :  { %v4434_v57 = vpop.permute.xlu0 %1980 }
 0x211   :  { %5104 = vst [vmem:[#allocation8_spill] sm:$0xff] %v4434_v57  ;;  %2334 = vperm.xlu1 %3207, %v4243_v18  }
 0x212   :  { %v4437_v19 = vpop.permute.xlu1 %1566 }
 0x213   :  { %1614 = vperm.xlu0 %3232, %v4291_v55  }
 0x215   :  { %3209 = vset.pattern.permute.xlu1 %v5079_v60  ;;  %v4441_v11 = vpop.permute.xlu0 %2594 }
 0x216   :  { %v4443_v13 = vpop.permute.xlu1 %1623  ;;  %2615 = vperm.xlu1 %3209, %v4240_v28  }
 0x217   :  { %3233 = vset.pattern.permute.xlu0 %v5091_v39 }
 0x218   :  { %1956 = vperm.xlu0 %3233, %v4294_v20  }
 0x219   :  { %v4448_v16 = vpop.permute.xlu0 %2654 }
 0x21a   :  { %5105 = vst [vmem:[#allocation13_spill] sm:$0xff] %v4448_v16  ;;  %3210 = vset.pattern.permute.xlu1 %v5096_v1 }
 0x21b   :  { %v4451_v4 = vpop.permute.xlu1 %1908  ;;  %1587 = vperm.xlu1 %3210, %v4246_v26  }
 0x21c   :  { %3236 = vset.pattern.permute.xlu0 %v5079_v60 }
 0x21d   :  { %2624 = vperm.xlu0 %3236, %v4266_v44  }
 0x21e   :  { %v4456_v15 = vpop.permute.xlu0 %1938 }
 0x21f   :  { %v4458_v56 = vpop.permute.xlu1 %1971  ;;  %1647 = vperm.xlu1 %3210, %v4256_v53  }
 0x221   :  { %3237 = vset.pattern.permute.xlu0 %v5081_v23 }
 0x222   :  { %v4462_v9 = vpop.permute.xlu0 %1998  ;;  %2244 = vperm.xlu0 %3237, %v4311_v27  }
 0x223   :  { %3212 = vset.pattern.permute.xlu1 %v5091_v39 }
 0x224   :  { %v4466_v58 = vpop.permute.xlu1 %2247  ;;  %1935 = vperm.xlu1 %3212, %v4249_v22  }
 0x226   :  { %2253 = vperm.xlu0 %3237, %v4175_v31  }
 0x227   :  { %v4470_v25 = vpop.permute.xlu0 %2612 }
 0x228   :  { %v4472_v62 = vpop.permute.xlu1 %2304  ;;  %1995 = vperm.xlu1 %3212, %v4259_v14  }
 0x229   :  { %5106 = vst [vmem:[#allocation14_spill] sm:$0xff] %v4472_v62 }
 0x22a   :  { %2259 = vperm.xlu0 %3237, %v4229_v42  }
 0x22c   :  { %3213 = vset.pattern.permute.xlu1 %v5081_v23  ;;  %v4477_v49 = vpop.permute.xlu0 %1932 }
 0x22d   :  { %v4479_v8 = vpop.permute.xlu1 %2582  ;;  %2268 = vperm.xlu1 %3213, %v4246_v26  }
 0x22e   :  { %2301 = vperm.xlu0 %3237, %v4287_v54  }
 0x230   :  { %v4483_v46 = vpop.permute.xlu0 %1992 }
 0x231   :  { %v4485_v31 = vpop.permute.xlu1 %2645  ;;  %2328 = vperm.xlu1 %3213, %v4256_v53  }
 0x232   :  { %5107 = vst [vmem:[#allocation15_spill] sm:$0xff] %v4485_v31  ;;  %2265 = vperm.xlu0 %3237, %v4216_v45  }
 0x235   :  { %3215 = vset.pattern.permute.xlu1 %v5079_v60  ;;  %v4490_v42 = vpop.permute.xlu0 %2606 }
 0x236   :  { %v4492_v29 = vpop.permute.xlu1 %1581  ;;  %2609 = vperm.xlu1 %3215, %v4249_v22   ;;  %2307 = vperm.xlu0 %3237, %v4318_v24  }
 0x23a   :  { %v4496_v26 = vpop.permute.xlu1 %1641  ;;  %3216 = vset.pattern.permute.xlu1 %v5096_v1  ;;  %v4499_v27 = vpop.permute.xlu0 %1950  ;;  %2271 = vperm.xlu0 %3237, %v4249_v22  }
 0x23b   :  { %1605 = vperm.xlu1 %3216, %v4266_v44  }
 0x23e   :  { %v4503_v45 = vpop.permute.xlu0 %1944  ;;  %2313 = vperm.xlu0 %3237, %v4159_v59  }
 0x23f   :  { %v4506_v51 = vpop.permute.xlu1 %1929  ;;  %3218 = vset.pattern.permute.xlu1 %v5091_v39 }
 0x240   :  { %1953 = vperm.xlu1 %3218, %v4269_v43  }
 0x242   :  { %2277 = vperm.xlu0 %3237, %v4240_v28  }
 0x243   :  { %v4511_v24 = vpop.permute.xlu1 %1989  ;;  %v4513_v60 = vpop.permute.xlu0 %2618 }
 0x244   :  { %3219 = vset.pattern.permute.xlu1 %v5081_v23 }
 0x245   :  { %2286 = vperm.xlu1 %3219, %v4266_v44  }
 0x246   :  { %2319 = vperm.xlu0 %3237, %v4232_v63  }
 0x248   :  { %v4518_v22 = vpop.permute.xlu1 %2262  ;;  %v4520_v59 = vpop.permute.xlu0 %1962 }
 0x249   :  { %3220 = vset.pattern.permute.xlu1 %v5096_v1 }
 0x24a   :  { %1599 = vperm.xlu1 %3220, %v4274_v33   ;;  %2283 = vperm.xlu0 %3237, %v4277_v30  }
 0x24c   :  { %v4525_v28 = vpop.permute.xlu1 %2322 }
 0x24d   :  { %5108 = vst [vmem:[#allocation16_spill] sm:$0xff] %v4525_v28  ;;  %v4527_v16 = vpop.permute.xlu0 %2636 }
 0x24e   :  { %5109 = vst [vmem:[#allocation17_spill] sm:$0xff] %v4527_v16  ;;  %3221 = vset.pattern.permute.xlu1 %v5091_v39  ;;  %2325 = vperm.xlu0 %3237, %v4219_v21   ;;  %v5111_v16 = vld [vmem:[#allocation5_spill] sm:$0xff] }
 0x24f   :  { %1947 = vperm.xlu1 %3221, %v4277_v30   ;;  %v2006_v50 = vrot.slane %v4451_v4, %v5111_v16 }
 0x251   :  { %v4532_v63 = vpop.permute.xlu1 %2603  ;;  %v4534_v44 = vpop.permute.xlu0 %2660 }
 0x252   :  { %5110 = vst [vmem:[#allocation18_spill] sm:$0xff] %v4534_v44  ;;  %2289 = vperm.xlu0 %3237, %v4269_v43  }
 0x253   :  { %3222 = vset.pattern.permute.xlu1 %v5081_v23  ;;  %v5112_v23 = vld [vmem:[#allocation6_spill] sm:$0xff] }
 0x254   :  { %2280 = vperm.xlu1 %3222, %v4274_v33   ;;  %v1674_v33 = vrot.slane %v4371_v34, %v5111_v16  ;;  %v1668_v62 = vrot.slane %v4437_v19, %v5112_v23  ;;  %v2010_v35 = vrot.slane %v4381_v52, %v5112_v23  ;;  %v2015_v34 = vrot.slane %v4384_v47, %v5111_v16 }
 0x255   :  { %v2024_v47 = vrot.slane %v4428_v41, %v5111_v16 }
 0x256   :  { %v1576_v12 = vpop.permute.xlu1 %1575  ;;  %v1564_v37 = vpop.permute.xlu0 %1563  ;;  %2331 = vperm.xlu0 %3237, %v4259_v14   ;;  %v2011_v19 = vsel %vm1669_vm1, %v2010_v35, %v2006_v50  ;;  %v2033_v50 = vrot.slane %v4407_v3, %v5111_v16 }
 0x257   :  { %v1663_v31 = vrot.slane %v1564_v37, %v5111_v16  ;;  %v2019_v37 = vrot.slane %v4391_v36, %v5112_v23  ;;  %v2037_v36 = vrot.slane %v4506_v51, %v5112_v23 }
 0x258   :  { %3224 = vset.pattern.permute.xlu1 %v5096_v1 }
 0x259   :  { %1617 = vperm.xlu1 %3224, %v4284_v38   ;;  %v1670_v4 = vsel %vm1669_vm1, %v1668_v62, %v1663_v31  ;;  %v1683_v62 = vrot.slane %v1576_v12, %v5111_v16  ;;  %v1692_v12 = vrot.slane %v4492_v29, %v5111_v16 }
 0x25a   :  { %v4545_v44 = vpop.permute.xlu1 %1635  ;;  %v1573_v28 = vpop.permute.xlu0 %1572  ;;  %2337 = vperm.xlu0 %3237, %v4252_v5  }
 0x25b   :  { %v1678_v6 = vrot.slane %v1573_v28, %v5112_v23 }
 0x25d   :  { %3226 = vset.pattern.permute.xlu1 %v5091_v39  ;;  %v1679_v57 = vsel %vm1669_vm1, %v1678_v6, %v1674_v33  ;;  %v2020_v33 = vsel %vm1669_vm1, %v2019_v37, %v2015_v34  ;;  %v5113_v34 = vmov 2  }
 0x25e   :  { %v1807_v28 = vsel %vm1806_vm2, %v1679_v57, %v1670_v4  ;;  %1965 = vperm.xlu1 %3226, %v4287_v54   ;;  %v1579_v52 = vpop.permute.xlu0 %1578  ;;  %2295 = vperm.xlu0 %3237, %v4291_v55   ;;  %v2147_v57 = vsel %vm1806_vm2, %v2020_v33, %v2011_v19 }
 0x25f   :  { %v1924_v31 = vpop.permute.xlu1 %1923  ;;  %v1687_v6 = vrot.slane %v1579_v52, %v5112_v23  ;;  %v5114_v52 = vmov 3  }
 0x260   :  { %v2028_v35 = vrot.slane %v1924_v31, %v5112_v23  ;;  %v2038_v31 = vsel %vm1669_vm1, %v2037_v36, %v2033_v50  ;;  %v3003_v36 = vld [vmem:[%s5064_s5 + $0x18] sm:$0xff] }
 0x261   :  { %v1688_v51 = vsel %vm1669_vm1, %v1687_v6, %v1683_v62  ;;  %v3002_v6 = vld [vmem:[%s5064_s5 + $0x10] sm:$0xff] }
 0x262   :  { %v2029_v4 = vsel %vm1669_vm1, %v2028_v35, %v2024_v47  ;;  %v1809_v37 = vsel %vm1808_vm3, %v1688_v51, %v1807_v28  ;;  %3227 = vset.pattern.permute.xlu1 %v5113_v34  ;;  %v1585_v41 = vpop.permute.xlu0 %1584  ;;  %3240 = vset.pattern.permute.xlu0 %v5114_v52  ;;  %v3133_v47 = vpack.c.bf16 %v3003_v36, %v3002_v6  ;;  %v1525_v36 = vld [vmem:[%s5064_s5] sm:$0xff] }
 0x263   :  { %v2148_v3 = vsel %vm1808_vm3, %v2029_v4, %v2147_v57  ;;  %v4586_v19 = vpop.permute.xlu1 %1983  ;;  %2298 = vperm.xlu1 %3227, %v4284_v38   ;;  %v1696_v62 = vrot.slane %v1585_v41, %v5112_v23  ;;  %2630 = vperm.xlu0 %3240, %v4294_v20   ;;  %v2680_v51 = vrot.slane %v4479_v8, %v5111_v16 }
 0x264   :  { %v4592_v29 = vsel %vm1810_vm4, %v2038_v31, %v2148_v3  ;;  %3134 = vmatprep.subr.bf16.mxu1 %v3133_v47  ;;  %v2698_v8 = vrot.slane %v4441_v11, %v5111_v16 }
 0x265   :  { %v1697_v28 = vsel %vm1669_vm1, %v1696_v62, %v1692_v12  ;;  %3136 = vmatpush3.bf16.msra.mxu1 %v3133_v47  ;;  %v2693_v12 = vrot.slane %v4424_v17, %v5112_v23 }
 0x266   :  { %v4602_v33 = vsel %vm1810_vm4, %v1697_v28, %v1809_v37  ;;  %v4604_v38 = vpop.permute.xlu0 %1590 }
 0x267   :  { %3229 = vset.pattern.permute.xlu1 %v5114_v52  ;;  %2666 = vperm.xlu0 %3240, %v4256_v53  }
 0x268   :  { %v4608_v35 = vpop.permute.xlu1 %2256  ;;  %2639 = vperm.xlu1 %3229, %v4287_v54   ;;  %v2684_v54 = vrot.slane %v4394_v7, %v5112_v23 }
 0x26a   :  { %v4611_v50 = vpop.permute.xlu0 %1596  ;;  %v2685_v4 = vsel %vm1669_vm1, %v2684_v54, %v2680_v51 }
 0x26b   :  { %2672 = vperm.xlu0 %3240, %v4243_v18   ;;  %v2689_v18 = vrot.slane %v4418_v10, %v5111_v16  ;;  %v2707_v10 = vrot.slane %v4420_v0, %v5111_v16 }
 0x26c   :  { %v4614_v57 = vpop.permute.xlu1 %2316  ;;  %3230 = vset.pattern.permute.xlu1 %v5096_v1  ;;  %v2711_v1 = vrot.slane %v4532_v63, %v5112_v23 }
 0x26d   :  { %1611 = vperm.xlu1 %3230, %v4294_v20   ;;  %v2694_v17 = vsel %vm1669_vm1, %v2693_v12, %v2689_v18  ;;  %v1773_v18 = vrot.slane %v4545_v44, %v5111_v16  ;;  %v1782_v44 = vrot.slane %v4496_v26, %v5111_v16 }
 0x26e   :  { %v4620_v53 = vpop.permute.xlu0 %1602  ;;  %v2821_v31 = vsel %vm1806_vm2, %v2694_v17, %v2685_v4  ;;  %v2712_v3 = vsel %vm1669_vm1, %v2711_v1, %v2707_v10 }
 0x271   :  { %v2598_v37 = vpop.permute.xlu1 %2597  ;;  %3231 = vset.pattern.permute.xlu1 %v5114_v52 }
 0x272   :  { %v2702_v41 = vrot.slane %v2598_v37, %v5112_v23  ;;  %2621 = vperm.xlu1 %3231, %v4277_v30   ;;  %v4636_v7 = vpop.permute.xlu0 %1608 }
 0x274   :  { %v2703_v63 = vsel %vm1669_vm1, %v2702_v41, %v2698_v8 }
 0x275   :  { %v2822_v62 = vsel %vm1808_vm3, %v2703_v63, %v2821_v31  ;;  %v4645_v11 = vpop.permute.xlu1 %2657 }
 0x276   :  { %3234 = vset.pattern.permute.xlu1 %v5091_v39  ;;  %v4648_v30 = vpop.permute.xlu0 %1620  ;;  %v4651_v28 = vsel %vm1810_vm4, %v2712_v3, %v2822_v62  ;;  %v1526_v39 = vld [vmem:[%s5064_s5 + $0x8] sm:$0xff] }
 0x277   :  { %1959 = vperm.xlu1 %3234, %v4291_v55   ;;  %v4664_v47 = vpack.c.bf16 %v1526_v39, %v1525_v36  ;;  %v2725_v36 = vrot.slane %v4470_v25, %v5111_v16 }
 0x279   :  { %3138 = vmatprep.subr.bf16.mxu1 %v4664_v47 }
 0x27a   :  { %v1594_v0 = vpop.permute.xlu1 %1593  ;;  %v4654_v6 = vpop.permute.xlu0 %1626 }
 0x27b   :  { %3235 = vset.pattern.permute.xlu1 %v5114_v52 }
 0x27c   :  { %2663 = vperm.xlu1 %3235, %v4219_v21   ;;  %v2051_v21 = vrot.slane %v4456_v15, %v5111_v16  ;;  %v2141_v15 = vrot.slane %v4462_v9, %v5111_v16 }
 0x27e   :  { %v4666_v51 = vpop.permute.xlu1 %1653  ;;  %v4668_v54 = vpop.permute.xlu0 %1632 }
 0x280   :  { %3238 = vset.pattern.permute.xlu1 %v5113_v34 }
 0x281   :  { %2292 = vperm.xlu1 %3238, %v4294_v20  }
 0x282   :  { %v1639_v12 = vpop.permute.xlu0 %1638 }
 0x283   :  { %v1942_v4 = vpop.permute.xlu1 %1941  ;;  %v1777_v1 = vrot.slane %v1639_v12, %v5112_v23 }
 0x284   :  { %v2055_v37 = vrot.slane %v1942_v4, %v5112_v23  ;;  %v1705_v4 = vrot.slane %v4604_v38, %v5112_v23 }
 0x285   :  { %3239 = vset.pattern.permute.xlu1 %v5114_v52  ;;  %v4681_v8 = vsel %vm1669_vm1, %v1777_v1, %v1773_v18  ;;  %v1714_v1 = vrot.slane %v4611_v50, %v5112_v23 }
 0x286   :  { %v2056_v34 = vsel %vm1669_vm1, %v2055_v37, %v2051_v21  ;;  %2627 = vperm.xlu1 %3239, %v4269_v43   ;;  %v1645_v20 = vpop.permute.xlu0 %1644 }
 0x287   :  { %v2002_v41 = vpop.permute.xlu1 %2001  ;;  %v1786_v17 = vrot.slane %v1645_v20, %v5112_v23 }
 0x288   :  { %v2145_v10 = vrot.slane %v2002_v41, %v5112_v23 }
 0x289   :  { %v4692_v52 = vsel %vm1669_vm1, %v1786_v17, %v1782_v44 }
 0x28a   :  { %v4695_v31 = vsel %vm1669_vm1, %v2145_v10, %v2141_v15  ;;  %2633 = vperm.xlu1 %3239, %v4291_v55   ;;  %v1651_v43 = vpop.permute.xlu0 %1650  ;;  %v2042_v10 = vrot.slane %v4477_v49, %v5111_v16 }
 0x28b   :  { %v1795_v44 = vrot.slane %v1651_v43, %v5112_v23 }
 0x28c   :  { %v4698_v63 = vpop.permute.xlu1 %2274 }
 0x28e   :  { %2669 = vperm.xlu1 %3239, %v4259_v14   ;;  %v4701_v26 = vpop.permute.xlu0 %1656  ;;  %v1710_v14 = vrot.slane %v1594_v0, %v5111_v16 }
 0x290   :  { %v4703_v3 = vpop.permute.xlu1 %2334  ;;  %v1715_v37 = vsel %vm1669_vm1, %v1714_v1, %v1710_v14  ;;  %v2132_v14 = vrot.slane %v4483_v46, %v5111_v16 }
 0x292   :  { %2675 = vperm.xlu1 %3239, %v4252_v5   ;;  %v4706_v9 = vpop.permute.xlu0 %1614 }
 0x295   :  { %v2616_v62 = vpop.permute.xlu1 %2615 }
 0x296   :  { %v2729_v39 = vrot.slane %v2616_v62, %v5112_v23 }
 0x297   :  { %v4711_v55 = vpop.permute.xlu0 %1956 }
 0x298   :  { %v2730_v12 = vsel %vm1669_vm1, %v2729_v39, %v2725_v36 }
 0x29a   :  { %v1588_v18 = vpop.permute.xlu1 %1587 }
 0x29b   :  { %v1701_v5 = vrot.slane %v1588_v18, %v5111_v16 }
 0x29c   :  { %v4720_v21 = vpop.permute.xlu0 %2624 }
 0x29d   :  { %v1706_v25 = vsel %vm1669_vm1, %v1705_v4, %v1701_v5 }
 0x29e   :  { %v1813_v0 = vsel %vm1812_vm5, %v1706_v25, %v4602_v33  ;;  %v1648_v20 = vpop.permute.xlu1 %1647 }
 0x29f   :  { %v1791_v38 = vrot.slane %v1648_v20, %v5111_v16  ;;  %v4729_v41 = vsel %vm1814_vm6, %v1715_v37, %v1813_v0  ;;  %v2346_v20 = vrot.slane %v4466_v58, %v5112_v23 }
 0x2a1   :  { %v4732_v50 = vsel %vm1669_vm1, %v1795_v44, %v1791_v38  ;;  %v2245_v17 = vpop.permute.xlu0 %2244 }
 0x2a2   :  { %v2342_v46 = vrot.slane %v2245_v17, %v5111_v16 }
 0x2a3   :  { %v1936_v15 = vpop.permute.xlu1 %1935 }
 0x2a4   :  { %v2046_v62 = vrot.slane %v1936_v15, %v5112_v23 }
 0x2a5   :  { %v2254_v36 = vpop.permute.xlu0 %2253 }
 0x2a6   :  { %v2047_v33 = vsel %vm1669_vm1, %v2046_v62, %v2042_v10  ;;  %v2355_v1 = vrot.slane %v2254_v36, %v5112_v23  ;;  %v2369_v62 = vrot.slane %v4518_v22, %v5111_v16 }
 0x2a7   :  { %v2150_v43 = vsel %vm1812_vm5, %v2047_v33, %v4592_v29  ;;  %v1996_v39 = vpop.permute.xlu1 %1995  ;;  %v2351_v29 = vrot.slane %v4405_v2, %v5111_v16  ;;  %v2347_v2 = vsel %vm1669_vm1, %v2346_v20, %v2342_v46 }
 0x2a8   :  { %v2136_v18 = vrot.slane %v1996_v39, %v5112_v23  ;;  %v4744_v4 = vsel %vm1814_vm6, %v2056_v34, %v2150_v43  ;;  %v2360_v34 = vrot.slane %v4608_v35, %v5111_v16 }
 0x2a9   :  { %v2260_v5 = vpop.permute.xlu0 %2259  ;;  %v2356_v44 = vsel %vm1669_vm1, %v2355_v1, %v2351_v29 }
 0x2aa   :  { %v4747_v49 = vsel %vm1669_vm1, %v2136_v18, %v2132_v14  ;;  %v2364_v37 = vrot.slane %v2260_v5, %v5112_v23  ;;  %v2483_v36 = vsel %vm1806_vm2, %v2356_v44, %v2347_v2  ;;  %v2716_v14 = vrot.slane %v4490_v42, %v5111_v16 }
 0x2ac   :  { %v2269_v25 = vpop.permute.xlu1 %2268  ;;  %v2365_v15 = vsel %vm1669_vm1, %v2364_v37, %v2360_v34 }
 0x2ad   :  { %v4751_v0 = vpop.permute.xlu0 %2301  ;;  %v2484_v35 = vsel %vm1808_vm3, %v2365_v15, %v2483_v36  ;;  %v2378_v37 = vrot.slane %v2269_v25, %v5111_v16 }
 0x2b0   :  { %v4761_v38 = vpop.permute.xlu1 %2328 }
 0x2b1   :  { %v2266_v10 = vpop.permute.xlu0 %2265 }
 0x2b2   :  { %v2373_v17 = vrot.slane %v2266_v10, %v5112_v23 }
 0x2b4   :  { %v2374_v58 = vsel %vm1669_vm1, %v2373_v17, %v2369_v62 }
 0x2b5   :  { %v2610_v33 = vpop.permute.xlu1 %2609  ;;  %v2485_v43 = vsel %vm1810_vm4, %v2374_v58, %v2484_v35  ;;  %v4772_v39 = vpop.permute.xlu0 %2307  ;;  %v1723_v35 = vrot.slane %v4620_v53, %v5112_v23 }
 0x2b6   :  { %v2720_v22 = vrot.slane %v2610_v33, %v5112_v23 }
 0x2b8   :  { %v2721_v18 = vsel %vm1669_vm1, %v2720_v22, %v2716_v14 }
 0x2b9   :  { %v2824_v5 = vsel %vm1812_vm5, %v2721_v18, %v4651_v28  ;;  %v2272_v1 = vpop.permute.xlu0 %2271  ;;  %v2387_v28 = vrot.slane %v4698_v63, %v5111_v16  ;;  %v1732_v63 = vrot.slane %v4636_v7, %v5112_v23  ;;  %v2069_v7 = vrot.slane %v4499_v27, %v5111_v16 }
 0x2ba   :  { %v1606_v29 = vpop.permute.xlu1 %1605  ;;  %v2382_v46 = vrot.slane %v2272_v1, %v5112_v23  ;;  %v4783_v34 = vsel %vm1814_vm6, %v2730_v12, %v2824_v5  ;;  %v2060_v5 = vrot.slane %v4503_v45, %v5111_v16 }
 0x2bb   :  { %v1728_v17 = vrot.slane %v1606_v29, %v5111_v16 }
 0x2bc   :  { %v2383_v20 = vsel %vm1669_vm1, %v2382_v46, %v2378_v37 }
 0x2bd   :  { %v2486_v42 = vsel %vm1812_vm5, %v2383_v20, %v2485_v43  ;;  %v4787_v44 = vpop.permute.xlu0 %2313  ;;  %v1733_v43 = vsel %vm1669_vm1, %v1732_v63, %v1728_v17  ;;  %v1759_v17 = vrot.slane %v4654_v6, %v5112_v23  ;;  %v1741_v63 = vrot.slane %v4706_v9, %v5112_v23 }
 0x2be   :  { %v1804_v9 = vrot.slane %v4701_v26, %v5112_v23 }
 0x2bf   :  { %v1954_v15 = vpop.permute.xlu1 %1953 }
 0x2c0   :  { %v2073_v22 = vrot.slane %v1954_v15, %v5112_v23 }
 0x2c1   :  { %v2278_v10 = vpop.permute.xlu0 %2277 }
 0x2c2   :  { %v2391_v62 = vrot.slane %v2278_v10, %v5112_v23  ;;  %v2074_v29 = vsel %vm1669_vm1, %v2073_v22, %v2069_v7  ;;  %v2734_v7 = vrot.slane %v4513_v60, %v5111_v16 }
 0x2c4   :  { %v4792_v25 = vpop.permute.xlu1 %2286  ;;  %v2392_v2 = vsel %vm1669_vm1, %v2391_v62, %v2387_v28 }
 0x2c5   :  { %v4796_v12 = vsel %vm1814_vm6, %v2392_v2, %v2486_v42  ;;  %v4823_v45 = vpop.permute.xlu0 %2319 }
 0x2c9   :  { %v1600_v36 = vpop.permute.xlu1 %1599  ;;  %v4825_v10 = vpop.permute.xlu0 %2283 }
 0x2ca   :  { %v1719_v58 = vrot.slane %v1600_v36, %v5111_v16 }
 0x2cc   :  { %v1724_v33 = vsel %vm1669_vm1, %v1723_v35, %v1719_v58  ;;  %v1750_v35 = vrot.slane %v4648_v30, %v5112_v23  ;;  %v1768_v58 = vrot.slane %v4668_v54, %v5112_v23 }
 0x2cd   :  { %v1817_v14 = vsel %vm1816_vm7, %v1724_v33, %v4729_v41  ;;  %v4829_v27 = vpop.permute.xlu0 %2325 }
 0x2ce   :  { %v1948_v18 = vpop.permute.xlu1 %1947  ;;  %v1819_v53 = vsel %vm1818_vm8, %v1733_v43, %v1817_v14  ;;  %v1755_v43 = vrot.slane %v4443_v13, %v5111_v16  ;;  %v1764_v14 = vrot.slane %v4378_v48, %v5111_v16  ;;  %v3008_v48 = vld [vmem:[%s5064_s5 + $0x20] sm:$0xff] }
 0x2cf   :  { %v2064_v1 = vrot.slane %v1948_v18, %v5112_v23  ;;  %3109 = vmatprep.mubr.msk.f32.mxu1 %vm1827_vm9, %v1819_v53 }
 0x2d0   :  { %v1760_v30 = vsel %vm1669_vm1, %v1759_v17, %v1755_v43  ;;  %v1769_v54 = vsel %vm1669_vm1, %v1768_v58, %v1764_v14 }
 0x2d1   :  { %v2065_v37 = vsel %vm1669_vm1, %v2064_v1, %v2060_v5  ;;  %v4833_v2 = vpop.permute.xlu0 %2289  ;;  %v3009_v1 = vld [vmem:[%s5064_s5 + $0x28] sm:$0xff] }
 0x2d2   :  { %v2152_v41 = vsel %vm1816_vm7, %v2065_v37, %v4744_v4  ;;  %v3141_v17 = vpack.c.bf16 %v3009_v1, %v3008_v48  ;;  %v3013_v48 = vld [vmem:[%s5064_s5 + $0x38] sm:$0xff] }
 0x2d3   :  { %v4820_v46 = vpop.permute.xlu1 %2280  ;;  %v2153_v20 = vsel %vm1818_vm8, %v2074_v29, %v2152_v41  ;;  %v1800_v29 = vrot.slane %v4666_v51, %v5111_v16  ;;  %v2109_v51 = vrot.slane %v4397_v61, %v5112_v23  ;;  %v2105_v61 = vrot.slane %v4367_v40, %v5111_v16 }
 0x2d5   :  { %v4856_v53 = vpop.permute.xlu0 %2331 }
 0x2d8   :  { %v1618_v42 = vpop.permute.xlu1 %1617 }
 0x2d9   :  { %v1746_v4 = vrot.slane %v1618_v42, %v5111_v16 }
 0x2db   :  { %v1751_v6 = vsel %vm1669_vm1, %v1750_v35, %v1746_v4 }
 0x2dd   :  { %v1966_v15 = vpop.permute.xlu1 %1965 }
 0x2de   :  { %v2091_v60 = vrot.slane %v1966_v15, %v5112_v23  ;;  %v2078_v15 = vrot.slane %v4711_v55, %v5111_v16  ;;  %v2127_v55 = vrot.slane %v4511_v24, %v5112_v23  ;;  %v2110_v24 = vsel %vm1669_vm1, %v2109_v51, %v2105_v61 }
 0x2e2   :  { %v4827_v28 = vpop.permute.xlu1 %2298 }
 0x2e7   :  { %v4831_v62 = vpop.permute.xlu1 %2639 }
 0x2ec   :  { %v1612_v36 = vpop.permute.xlu1 %1611 }
 0x2ed   :  { %v1737_v33 = vrot.slane %v1612_v36, %v5111_v16  ;;  %v1805_v36 = vsel %vm1669_vm1, %v1804_v9, %v1800_v29 }
 0x2ef   :  { %v1742_v22 = vsel %vm1669_vm1, %v1741_v63, %v1737_v33  ;;  %v2087_v33 = vrot.slane %v4520_v59, %v5111_v16  ;;  %v2118_v59 = vrot.slane %v4586_v19, %v5112_v23 }
 0x2f0   :  { %v1820_v18 = vsel %vm1806_vm2, %v1751_v6, %v1742_v22  ;;  %v5116_v22 = vld [vmem:[#allocation12_spill] sm:$0xff] }
 0x2f1   :  { %v1821_v13 = vsel %vm1808_vm3, %v1760_v30, %v1820_v18  ;;  %v2622_v5 = vpop.permute.xlu1 %2621  ;;  %v2092_v14 = vsel %vm1669_vm1, %v2091_v60, %v2087_v33  ;;  %v2436_v60 = vrot.slane %v4772_v39, %v5112_v23  ;;  %v5118_v39 = vld [vmem:[#allocation14_spill] sm:$0xff] }
 0x2f2   :  { %v1822_v37 = vsel %vm1810_vm4, %v1769_v54, %v1821_v13  ;;  %v2738_v26 = vrot.slane %v2622_v5, %v5112_v23  ;;  %v2405_v13 = vrot.slane %v4792_v25, %v5111_v16  ;;  %v3012_v5 = vld [vmem:[%s5064_s5 + $0x30] sm:$0xff] }
 0x2f3   :  { %v1823_v41 = vsel %vm1812_vm5, %v4681_v8, %v1822_v37  ;;  %v2100_v8 = vrot.slane %v4458_v56, %v5112_v23  ;;  %v2096_v56 = vrot.slane %v4387_v32, %v5111_v16  ;;  %v5115_v32 = vld [vmem:[#allocation8_spill] sm:$0xff] }
 0x2f4   :  { %v2739_v42 = vsel %vm1669_vm1, %v2738_v26, %v2734_v7  ;;  %v1824_v4 = vsel %vm1814_vm6, %v4692_v52, %v1823_v41  ;;  %v2114_v6 = vrot.slane %v5115_v32, %v5111_v16  ;;  %v2423_v41 = vrot.slane %v4827_v28, %v5111_v16 }
 0x2f5   :  { %v1825_v35 = vsel %vm1816_vm7, %v4732_v50, %v1824_v4  ;;  %v4882_v58 = vsel %vm1816_vm7, %v2739_v42, %v4783_v34  ;;  %v2396_v50 = vrot.slane %v4820_v46, %v5111_v16  ;;  %v4895_v34 = vpop.permute.xlu0 %2337  ;;  %v2400_v46 = vrot.slane %v4825_v10, %v5112_v23 }
 0x2f6   :  { %v1960_v63 = vpop.permute.xlu1 %1959  ;;  %v1826_v52 = vsel %vm1818_vm8, %v1805_v36, %v1825_v35  ;;  %v2101_v19 = vsel %vm1669_vm1, %v2100_v8, %v2096_v56  ;;  %v2123_v10 = vrot.slane %v5116_v22, %v5111_v16  ;;  %v2119_v9 = vsel %vm1669_vm1, %v2118_v59, %v2114_v6 }
 0x2f7   :  { %v2082_v43 = vrot.slane %v1960_v63, %v5112_v23  ;;  %3110 = vmatmul.mubr.msk.f32.vlgmr.msra.gmra.mrb[12].mxu1 %vm1827_vm9, %v1826_v52  ;;  %v2401_v30 = vsel %vm1669_vm1, %v2400_v46, %v2396_v50  ;;  %v3145_v4 = vpack.c.bf16 %v3013_v48, %v3012_v5  ;;  %v2427_v36 = vrot.slane %v4751_v0, %v5112_v23  ;;  %v5117_v0 = vld [vmem:[#allocation11_spill] sm:$0xff]  ;;  %v5122_v48 = vld [vmem:[#allocation17_spill] sm:$0xff] }
 0x2f8   :  { %3116 = vmatprep.mubr.msk.f32.mxu1 %vm1827_vm9, %v2153_v20  ;;  %3140 = vmatpush3.bf16.msra.mxu1 %v4664_v47  ;;  %v2409_v20 = vrot.slane %v4833_v2, %v5112_v23  ;;  %v2128_v1 = vsel %vm1669_vm1, %v2127_v55, %v2123_v10  ;;  %v2488_v25 = vsel %vm1816_vm7, %v2401_v30, %v4796_v12  ;;  %v5121_v30 = vld [vmem:[#allocation15_spill] sm:$0xff] }
 0x2f9   :  { %v2083_v40 = vsel %vm1669_vm1, %v2082_v43, %v2078_v15  ;;  %3142 = vmatprep.subr.bf16.mxu1 %v3141_v17  ;;  %v2296_v7 = vpop.permute.xlu0 %2295  ;;  %v2445_v12 = vrot.slane %v4787_v44, %v5112_v23  ;;  %v2441_v63 = vrot.slane %v5117_v0, %v5111_v16  ;;  %v2432_v52 = vrot.slane %v5118_v39, %v5111_v16  ;;  %v5119_v44 = vld [vmem:[#allocation16_spill] sm:$0xff] }
 0x2fa   :  { %v2154_v47 = vsel %vm1806_vm2, %v2092_v14, %v2083_v40  ;;  %v2410_v26 = vsel %vm1669_vm1, %v2409_v20, %v2405_v13  ;;  %v2418_v8 = vrot.slane %v2296_v7, %v5112_v23  ;;  %v2459_v33 = vrot.slane %v5119_v44, %v5111_v16 }
 0x2fb   :  { %v2155_v18 = vsel %vm1808_vm3, %v2101_v19, %v2154_v47  ;;  %v4924_v54 = vpop.permute.xlu1 %2663  ;;  %v2463_v15 = vrot.slane %v4829_v27, %v5112_v23  ;;  %v2428_v50 = vsel %vm1669_vm1, %v2427_v36, %v2423_v41  ;;  %v2450_v56 = vrot.slane %v4614_v57, %v5111_v16  ;;  %v5120_v19 = vld [vmem:[#allocation7_spill] sm:$0xff] }
 0x2fc   :  { %v2156_v2 = vsel %vm1810_vm4, %v2110_v24, %v2155_v18  ;;  %v2743_v55 = vrot.slane %v4720_v21, %v5111_v16  ;;  %v2446_v27 = vsel %vm1669_vm1, %v2445_v12, %v2441_v63  ;;  %v2481_v46 = vrot.slane %v4895_v34, %v5112_v23 }
 0x2fd   :  { %v2157_v37 = vsel %vm1812_vm5, %v2119_v9, %v2156_v2  ;;  %v2631_v43 = vpop.permute.xlu0 %2630  ;;  %v2468_v57 = vrot.slane %v4761_v38, %v5111_v16  ;;  %v2783_v21 = vrot.slane %v5120_v19, %v5112_v23  ;;  %v2477_v20 = vrot.slane %v4703_v3, %v5111_v16 }
 0x2fe   :  { %v2158_v29 = vsel %vm1814_vm6, %v2128_v1, %v2157_v37  ;;  %v2464_v34 = vsel %vm1669_vm1, %v2463_v15, %v2459_v33  ;;  %v2765_v38 = vrot.slane %v4831_v62, %v5112_v23  ;;  %v2774_v18 = vrot.slane %v5121_v30, %v5112_v23 }
 0x2ff   :  { %v2159_v42 = vsel %vm1816_vm7, %v4747_v49, %v2158_v29  ;;  %v2489_v49 = vsel %vm1818_vm8, %v2410_v26, %v2488_v25  ;;  %v2482_v9 = vsel %vm1669_vm1, %v2481_v46, %v2477_v20  ;;  %v2761_v1 = vrot.slane %v5122_v48, %v5111_v16  ;;  %v5123_v26 = vld [vmem:[#allocation10_spill] sm:$0xff]  ;;  %v5124_v25 = vld [vmem:[#allocation9_spill] sm:$0xff] }
 0x300   :  { %v2293_v35 = vpop.permute.xlu1 %2292  ;;  %v2160_v51 = vsel %vm1818_vm8, %v4695_v31, %v2159_v42  ;;  %v2454_v31 = vrot.slane %v4823_v45, %v5112_v23  ;;  %v2437_v45 = vsel %vm1669_vm1, %v2436_v60, %v2432_v52  ;;  %v2752_v62 = vrot.slane %v2631_v43, %v5111_v16 }
 0x301   :  { %v2414_v28 = vrot.slane %v2293_v35, %v5111_v16  ;;  %3117 = vmatmul.mubr.msk.f32.vlgmr.msra.gmra.mrb[12].mxu1 %vm1827_vm9, %v2160_v51  ;;  %v2667_v13 = vpop.permute.xlu0 %2666  ;;  %v2779_v29 = vrot.slane %v5123_v26, %v5111_v16  ;;  %v2770_v41 = vrot.slane %v5124_v25, %v5111_v16  ;;  %v2792_v42 = vrot.slane %v4645_v11, %v5112_v23  ;;  %v5125_v35 = vld [vmem:[#allocation13_spill] sm:$0xff] }
 0x302   :  { %3123 = vmatprep.mubr.msk.f32.mxu1 %vm1827_vm9, %v2489_v49  ;;  %3144 = vmatpush3.bf16.msra.mxu1 %v3141_v17  ;;  %v2472_v17 = vrot.slane %v4856_v53, %v5112_v23  ;;  %v2455_v32 = vsel %vm1669_vm1, %v2454_v31, %v2450_v56  ;;  %v2801_v36 = vrot.slane %v4924_v54, %v5112_v23  ;;  %v5126_v49 = vld [vmem:[#allocation18_spill] sm:$0xff] }
 0x303   :  { %v2419_v61 = vsel %vm1669_vm1, %v2418_v8, %v2414_v28  ;;  %3146 = vmatprep.subr.bf16.mxu1 %v3145_v4  ;;  %v2788_v51 = vrot.slane %v5125_v35, %v5111_v16  ;;  %v2775_v12 = vsel %vm1669_vm1, %v2774_v18, %v2770_v41  ;;  %v2784_v28 = vsel %vm1669_vm1, %v2783_v21, %v2779_v29 }
 0x304   :  { %v2490_v59 = vsel %vm1806_vm2, %v2428_v50, %v2419_v61  ;;  %v2473_v24 = vsel %vm1669_vm1, %v2472_v17, %v2468_v57  ;;  %v2797_v0 = vrot.slane %v5126_v49, %v5111_v16 }
 0x305   :  { %v2491_v14 = vsel %vm1808_vm3, %v2437_v45, %v2490_v59  ;;  %v2628_v40 = vpop.permute.xlu1 %2627  ;;  %v2793_v39 = vsel %vm1669_vm1, %v2792_v42, %v2788_v51  ;;  %v2673_v52 = vpop.permute.xlu0 %2672 }
 0x306   :  { %v2492_v53 = vsel %vm1810_vm4, %v2446_v27, %v2491_v14  ;;  %v2747_v6 = vrot.slane %v2628_v40, %v5112_v23  ;;  %v2802_v44 = vsel %vm1669_vm1, %v2801_v36, %v2797_v0  ;;  %v2815_v61 = vrot.slane %v2673_v52, %v5111_v16  ;;  %v3016_v27 = vld [vmem:[%s5065_s6] ss:$0 sm:$0xff] }
 0x307   :  { %v2493_v47 = vsel %vm1812_vm5, %v2455_v32, %v2492_v53 }
 0x308   :  { %v2748_v22 = vsel %vm1669_vm1, %v2747_v6, %v2743_v55  ;;  %v2494_v10 = vsel %vm1814_vm6, %v2464_v34, %v2493_v47 }
 0x309   :  { %v2634_v3 = vpop.permute.xlu1 %2633  ;;  %v2495_v2 = vsel %vm1816_vm7, %v2473_v24, %v2494_v10  ;;  %v2827_v5 = vsel %vm1818_vm8, %v2748_v22, %v4882_v58  ;;  %v2766_v58 = vsel %vm1669_vm1, %v2765_v38, %v2761_v1 }
 0x30a   :  { %v2756_v7 = vrot.slane %v2634_v3, %v5112_v23  ;;  %v2496_v37 = vsel %vm1818_vm8, %v2482_v9, %v2495_v2 }
 0x30b   :  { %3124 = vmatmul.mubr.msk.f32.vlgmr.msra.gmra.mrb[12].mxu1 %vm1827_vm9, %v2496_v37 }
 0x30c   :  { %v2757_v60 = vsel %vm1669_vm1, %v2756_v7, %v2752_v62  ;;  %3130 = vmatprep.mubr.msk.f32.mxu1 %vm1827_vm9, %v2827_v5  ;;  %3148 = vmatpush3.bf16.msra.mxu1 %v3145_v4  ;;  %v2806_v4 = vrot.slane %v2667_v13, %v5111_v16 }
 0x30d   :  { %v2828_v8 = vsel %vm1806_vm2, %v2766_v58, %v2757_v60  ;;  %v2670_v11 = vpop.permute.xlu1 %2669 }
 0x30e   :  { %v2829_v54 = vsel %vm1808_vm3, %v2775_v12, %v2828_v8  ;;  %v2810_v63 = vrot.slane %v2670_v11, %v5112_v23 }
 0x30f   :  { %v2830_v31 = vsel %vm1810_vm4, %v2784_v28, %v2829_v54 }
 0x310   :  { %v2831_v33 = vsel %vm1812_vm5, %v2793_v39, %v2830_v31  ;;  %v2811_v50 = vsel %vm1669_vm1, %v2810_v63, %v2806_v4 }
 0x311   :  { %v2832_v15 = vsel %vm1814_vm6, %v2802_v44, %v2831_v33  ;;  %v2676_v43 = vpop.permute.xlu1 %2675 }
 0x312   :  { %v2819_v56 = vrot.slane %v2676_v43, %v5112_v23  ;;  %v2833_v45 = vsel %vm1816_vm7, %v2811_v50, %v2832_v15 }
 0x314   :  { %v2820_v17 = vsel %vm1669_vm1, %v2819_v56, %v2815_v61 }
 0x315   :  { %v2834_v59 = vsel %vm1818_vm8, %v2820_v17, %v2833_v45 }
 0x316   :  { %3131 = vmatmul.mubr.msk.f32.vlgmr.msra.gmra.mrb[12].mxu1 %vm1827_vm9, %v2834_v59 }
 0x3e9   :  { %v3132_v55 = vpop.f32.mrb[12].mxu1 }
 0x3ea   :  { %v2917_v46 = vmul.f32 0.25, %v3132_v55  ;;  %v2905_v14 = vpop.f32.mrb[13].mxu1 }
 0x3eb   :  { %v2916_v40 = vmul.f32 0.25, %v2905_v14 }
 0x3ec   :  { %v2926_v57 = vadd.f32 %v3016_v27, %v2917_v46 }
 0x3ed   :  { %v2925_v16 = vadd.f32 %v3016_v27, %v2916_v40 }
 0x3ee   :  { %vm2928_vm10 = vcmp.ge.f32.partialorder %v2926_v57, 0.0  ;;  %v2930_v23 = vmul.f32 0.2, %v2926_v57 }
 0x3ef   :  { %vm2927_vm12 = vcmp.ge.f32.partialorder %v2925_v16, 0.0  ;;  %v2929_v32 = vmul.f32 0.2, %v2925_v16 }
 0x3f0   :  { %v2932_v53 = vsel %vm2928_vm10, %v2926_v57, %v2930_v23 }
 0x3f1   :  { %2935 = vst.msk [vmem:[#allocation2 + $0x8] sm:$0xff] %vm2933_vm11, %v2932_v53  ;;  %v2931_v6 = vsel %vm2927_vm12, %v2925_v16, %v2929_v32 }
 0x3f2   :  { %2934 = vst.msk [vmem:[#allocation2] sm:$0xff] %vm2933_vm11, %v2931_v6 }
 0x3f3   :  { %3356 = shalt.err (!%p3353_p4)
}
 0x3f4   :  { %s3357_s17 = scalar_lea.hbm %s5066_s7, 256 }
 0x3f5   :  { %p3358_p5 = scmp.ne.s32.totalorder %s5066_s7, %s3357_s17  ;;  %p3361_p6 = scmp.lt.u32.totalorder %s3357_s17, %s5066_s7 }
 0x3f7   :  { %p3363_p7 = pnand %p3361_p6, %p3358_p5 }
 0x3f9   :  { %3366 = shalt.err (!%p3363_p7)
}
 0x3fa   :  { %s3375_s21 = smov 128   ;;  %s3376_s22 = smov 8  }
 0x3fb   :  { %2947 = dma.vmem_to_hbm [thread:$0]  %s2942_s14, 256, %s5066_s7, [#allocation3], %s3375_s21, %s3375_s21, %s3376_s22  }
 0x3fc   :  { %3367 = dma.done.wait [#allocation3], 256  }
 0x3fd   :  { %3368 = vsyncadd [#allocation3], 4294967040 }
 0x3fe   :  { %2951 = vsyncpa [#allocation3], 1 }

</bundles_post_ra>
